<compile_context>
chip_gen: v6e
topology: v6e:2x2x1
jax: 0.10.0
libtpu: 0.0.40
codegen_flags: <defaults>
</compile_context>

<pallas_src>
import functools
import math

import jax
import jax.numpy as jnp
from jax.experimental import pallas as pl
from jax.experimental.pallas import tpu as pltpu


def _self_attention_kernel(*refs, has_pe, nhead, seq_len, nb, eps):
    if has_pe:
        (x_ref, pe_ref, wq_ref, wk_ref, wv_ref, wo_ref,
         bq_ref, bk_ref, bv_ref, bo_ref, gamma_ref, beta_ref, o_ref) = refs
    else:
        (x_ref, wq_ref, wk_ref, wv_ref, wo_ref,
         bq_ref, bk_ref, bv_ref, bo_ref, gamma_ref, beta_ref, o_ref) = refs
        pe_ref = None

    D = x_ref.shape[-1]
    dh = D // nhead
    scale = jnp.float32(1.0 / math.sqrt(dh))

    x = x_ref[...].astype(jnp.float32)                        # (rows, D)
    if has_pe:
        qk_in = x + pe_ref[...].astype(jnp.float32)
    else:
        qk_in = x

    # Q / K / V projections: fat (rows, D) @ (D, D) bf16 MXU dots, f32 accum,
    # biases added in f32.
    x_bf = x.astype(jnp.bfloat16)
    qk_bf = qk_in.astype(jnp.bfloat16)
    q = jnp.dot(qk_bf, wq_ref[...], preferred_element_type=jnp.float32) + bq_ref[...]
    k = jnp.dot(qk_bf, wk_ref[...], preferred_element_type=jnp.float32) + bk_ref[...]
    v = jnp.dot(x_bf, wv_ref[...], preferred_element_type=jnp.float32) + bv_ref[...]

    # Head-major stacking: (nhead*nb, S, dh) built from static column slices
    # and cheap sublane-group reshapes; everything stays in registers.
    def to_heads(t):
        t_bf = t.astype(jnp.bfloat16)
        per_head = [t_bf[:, h * dh:(h + 1) * dh].reshape(nb, seq_len, dh)
                    for h in range(nhead)]
        return jnp.concatenate(per_head, axis=0)              # index = h*nb + b

    qh, kh, vh = to_heads(q), to_heads(k), to_heads(v)

    # One batched score dot and ONE fused softmax over the stacked slab
    # (instead of nhead tiny per-head reductions).
    scores = jnp.einsum("bqd,bkd->bqk", qh, kh,
                        preferred_element_type=jnp.float32) * scale
    m = jnp.max(scores, axis=-1, keepdims=True)
    e = jnp.exp(scores - m)
    denom = jnp.sum(e, axis=-1, keepdims=True)
    probs = e * pl.reciprocal(denom, approx=True)             # EUP vrcp slot

    attn_h = jnp.einsum("bqk,bkd->bqd", probs.astype(jnp.bfloat16), vh,
                        preferred_element_type=jnp.float32)   # (nhead*nb, S, dh)

    # Reassemble a lane-dense (rows, D) attention slab in registers
    # (no VMEM scratch round-trip, no masked stripe stores).
    per_batch = []
    for b in range(nb):
        cols = [attn_h[h * nb + b] for h in range(nhead)]     # nhead x (S, dh)
        per_batch.append(jnp.concatenate(cols, axis=-1))      # (S, D)
    attn = jnp.concatenate(per_batch, axis=0)                 # (rows, D)

    # Output projection + residual (dropout p=0.0 -> identity).
    proj = jnp.dot(attn.astype(jnp.bfloat16), wo_ref[...],
                   preferred_element_type=jnp.float32) + bo_ref[...]
    y = proj + x

    # LayerNorm over features: two-pass variance (numerically stable form),
    # rsqrt on the EUP, no per-element divides.
    inv_n = jnp.float32(1.0 / D)
    mean = jnp.sum(y, axis=-1, keepdims=True) * inv_n
    c = y - mean
    var = jnp.sum(c * c, axis=-1, keepdims=True) * inv_n
    inv_std = jax.lax.rsqrt(var + jnp.float32(eps))
    o_ref[...] = (gamma_ref[...] * c * inv_std + beta_ref[...]).astype(o_ref.dtype)


def _pick_batch_block(batch, seq_len, rows_target=128):
    """Largest batch fold (a divisor of `batch`) whose row block is sublane-
    aligned and <= rows_target, preferring to keep >= 2 grid steps (pipelining
    overlap + v7x two-TC sharding). 128 rows already saturates the v5e MXU;
    larger batches naturally reach 128+ rows per step on v6e/v7x."""
    divisors = [d for d in range(1, batch + 1) if batch % d == 0]

    def fits(d):
        rows = d * seq_len
        aligned = (rows % 8 == 0) or (d == batch)     # (8,128) block rule
        return aligned and rows <= max(rows_target, seq_len)

    cands = [d for d in divisors if fits(d) and batch // d >= 2]
    if not cands:
        cands = [d for d in divisors if fits(d)] or [batch]
    return max(cands)


def _pick_vmem_limit():
    """Per-generation VMEM cap: ~0.8x physical, capped at 100 MiB
    (v7x: ~51 MiB of its 64 MiB; v5e/v6e: 100 MiB of 128 MiB)."""
    cap = None
    try:
        cap = getattr(pltpu.get_tpu_info(), "vmem_capacity_bytes", None)
    except Exception:
        cap = None
    if not cap:
        return 48 * 1024 * 1024                      # conservative, fits v7x
    return min(int(cap) * 4 // 5, 100 * 1024 * 1024)


def self_attention_layer(x, pe, params, *, nhead=8, eps=1e-5):
    """Fused MultiheadAttention + residual + LayerNorm forward.

    x:  (B, S, D) float32
    pe: (B, S, D) float32 or None
    params: dict with wq/wk/wv/wo (D, D), bq/bk/bv/bo (D,), gamma/beta (D,)
    """
    B, S, D = x.shape
    assert D % nhead == 0, "d_model must be divisible by nhead"
    has_pe = pe is not None

    nb = _pick_batch_block(B, S)
    rows_blk = nb * S
    grid = (B // nb,)

    # Flatten (B, S) -> rows in the wrapper (free metadata reshape in HBM) so
    # each grid step runs rows_blk-row projection matmuls.
    row_spec = pl.BlockSpec((rows_blk, D), lambda i: (i, 0))
    mat_spec = pl.BlockSpec((D, D), lambda i: (0, 0))        # constant window
    vec_spec = pl.BlockSpec((1, D), lambda i: (0, 0))

    args = [x.reshape(B * S, D)]
    in_specs = [row_spec]
    if has_pe:
        args.append(pe.reshape(B * S, D))
        in_specs.append(row_spec)

    bf16, f32 = jnp.bfloat16, jnp.float32
    args += [
        params["wq"].astype(bf16), params["wk"].astype(bf16),
        params["wv"].astype(bf16), params["wo"].astype(bf16),
        params["bq"].reshape(1, D).astype(f32), params["bk"].reshape(1, D).astype(f32),
        params["bv"].reshape(1, D).astype(f32), params["bo"].reshape(1, D).astype(f32),
        params["gamma"].reshape(1, D).astype(f32), params["beta"].reshape(1, D).astype(f32),
    ]
    in_specs += [mat_spec] * 4 + [vec_spec] * 6

    kernel = functools.partial(
        _self_attention_kernel, has_pe=has_pe, nhead=nhead,
        seq_len=S, nb=nb, eps=eps)

    out = pl.pallas_call(
        kernel,
        out_shape=jax.ShapeDtypeStruct((B * S, D), x.dtype),
        grid_spec=pltpu.PrefetchScalarGridSpec(
            num_scalar_prefetch=0,
            grid=grid,
            in_specs=in_specs,
            out_specs=row_spec,
        ),
        compiler_params=pltpu.CompilerParams(
            dimension_semantics=("parallel",),
            vmem_limit_bytes=_pick_vmem_limit(),
        ),
    )(*args)
    return out.reshape(B, S, D)


def reference_self_attention(x, pe, params, *, nhead=8, eps=1e-5):
    x = x.astype(jnp.float32)
    qk_in = x + pe if pe is not None else x
    q = qk_in @ params["wq"] + params["bq"]
    k = qk_in @ params["wk"] + params["bk"]
    v = x @ params["wv"] + params["bv"]

    B, S, D = x.shape
    dh = D // nhead
    q = q.reshape(B, S, nhead, dh).transpose(0, 2, 1, 3)
    k = k.reshape(B, S, nhead, dh).transpose(0, 2, 1, 3)
    v = v.reshape(B, S, nhead, dh).transpose(0, 2, 1, 3)

    scores = jnp.einsum("bhqd,bhkd->bhqk", q, k) / jnp.sqrt(jnp.float32(dh))
    probs = jax.nn.softmax(scores, axis=-1)
    attn = jnp.einsum("bhqk,bhkd->bhqd", probs, v)
    attn = attn.transpose(0, 2, 1, 3).reshape(B, S, D)

    y = attn @ params["wo"] + params["bo"] + x
    mean = jnp.mean(y, axis=-1, keepdims=True)
    var = jnp.mean((y - mean) ** 2, axis=-1, keepdims=True)
    return params["gamma"] * (y - mean) / jnp.sqrt(var + eps) + params["beta"]


if __name__ == "__main__":
    key = jax.random.PRNGKey(0)
    B, S, D, H = 2, 8, 256, 8          # batch=2, seq=8, d_model=256, nhead=8

    keys = jax.random.split(key, 12)
    w_scale = (2.0 / (D + D)) ** 0.5   # xavier-like scale

    x = jax.random.normal(keys[0], (B, S, D), dtype=jnp.float32)
    pe = 0.1 * jax.random.normal(keys[1], (B, S, D), dtype=jnp.float32)

    params = {
        "wq": w_scale * jax.random.normal(keys[2], (D, D), dtype=jnp.float32),
        "wk": w_scale * jax.random.normal(keys[3], (D, D), dtype=jnp.float32),
        "wv": w_scale * jax.random.normal(keys[4], (D, D), dtype=jnp.float32),
        "wo": w_scale * jax.random.normal(keys[5], (D, D), dtype=jnp.float32),
        "bq": 0.05 * jax.random.normal(keys[6], (D,), dtype=jnp.float32),
        "bk": 0.05 * jax.random.normal(keys[7], (D,), dtype=jnp.float32),
        "bv": 0.05 * jax.random.normal(keys[8], (D,), dtype=jnp.float32),
        "bo": 0.05 * jax.random.normal(keys[9], (D,), dtype=jnp.float32),
        "gamma": 1.0 + 0.1 * jax.random.normal(keys[10], (D,), dtype=jnp.float32),
        "beta": 0.1 * jax.random.normal(keys[11], (D,), dtype=jnp.float32),
    }

    out = self_attention_layer(x, pe, params, nhead=H, eps=1e-5)
    out = jax.block_until_ready(out)

    ref = reference_self_attention(x, pe, params, nhead=H, eps=1e-5)
    assert out.shape == x.shape
    # Kernel uses bf16 MXU operands (f32 accumulation) and the approximate EUP
    # reciprocal for the softmax denominator, so compare against the full-f32
    # reference with a precision-appropriate tolerance.
    assert jnp.allclose(out, ref, atol=3e-2, rtol=3e-2), "mismatch vs reference"

    print("KERNEL_OK")
</pallas_src>

<mosaic_0001>
module attributes {stable_mosaic.version = 11 : i64} {
  func.func @_self_attention_kernel(%arg0: i32, %arg1: memref<8x256xf32, #tpu.memory_space<vmem>>, %arg2: memref<8x256xf32, #tpu.memory_space<vmem>>, %arg3: memref<256x256xbf16, #tpu.memory_space<vmem>>, %arg4: memref<256x256xbf16, #tpu.memory_space<vmem>>, %arg5: memref<256x256xbf16, #tpu.memory_space<vmem>>, %arg6: memref<256x256xbf16, #tpu.memory_space<vmem>>, %arg7: memref<1x256xf32, #tpu.memory_space<vmem>>, %arg8: memref<1x256xf32, #tpu.memory_space<vmem>>, %arg9: memref<1x256xf32, #tpu.memory_space<vmem>>, %arg10: memref<1x256xf32, #tpu.memory_space<vmem>>, %arg11: memref<1x256xf32, #tpu.memory_space<vmem>>, %arg12: memref<1x256xf32, #tpu.memory_space<vmem>>, %arg13: memref<8x256xf32, #tpu.memory_space<vmem>>) attributes {dimension_semantics = [#tpu.dimension_semantics<parallel>], iteration_bounds = array<i64: 2>, scalar_prefetch = 0 : i64, scratch_operands = 0 : i64, tpu.core_type = #tpu.core_type<tc>, window_params = [{transform_indices = @transform_0, window_bounds = array<i64: 8, 256>}, {transform_indices = @transform_1, window_bounds = array<i64: 8, 256>}, {pipeline_mode = #tpu.pipeline_mode<synchronous>, transform_indices = @transform_2, window_bounds = array<i64: 256, 256>}, {pipeline_mode = #tpu.pipeline_mode<synchronous>, transform_indices = @transform_3, window_bounds = array<i64: 256, 256>}, {pipeline_mode = #tpu.pipeline_mode<synchronous>, transform_indices = @transform_4, window_bounds = array<i64: 256, 256>}, {pipeline_mode = #tpu.pipeline_mode<synchronous>, transform_indices = @transform_5, window_bounds = array<i64: 256, 256>}, {pipeline_mode = #tpu.pipeline_mode<synchronous>, transform_indices = @transform_6, window_bounds = array<i64: 1, 256>}, {pipeline_mode = #tpu.pipeline_mode<synchronous>, transform_indices = @transform_7, window_bounds = array<i64: 1, 256>}, {pipeline_mode = #tpu.pipeline_mode<synchronous>, transform_indices = @transform_8, window_bounds = array<i64: 1, 256>}, {pipeline_mode = #tpu.pipeline_mode<synchronous>, transform_indices = @transform_9, window_bounds = array<i64: 1, 256>}, {pipeline_mode = #tpu.pipeline_mode<synchronous>, transform_indices = @transform_10, window_bounds = array<i64: 1, 256>}, {pipeline_mode = #tpu.pipeline_mode<synchronous>, transform_indices = @transform_11, window_bounds = array<i64: 1, 256>}, {transform_indices = @transform_12, window_bounds = array<i64: 8, 256>}]} {
    %c0 = arith.constant 0 : index
    %c0_0 = arith.constant 0 : index
    %0 = vector.load %arg1[%c0, %c0_0] : memref<8x256xf32, #tpu.memory_space<vmem>>, vector<8x256xf32>
    %c0_1 = arith.constant 0 : index
    %c0_2 = arith.constant 0 : index
    %1 = vector.load %arg2[%c0_1, %c0_2] : memref<8x256xf32, #tpu.memory_space<vmem>>, vector<8x256xf32>
    %2 = arith.addf %0, %1 : vector<8x256xf32>
    %3 = arith.truncf %0 : vector<8x256xf32> to vector<8x256xbf16>
    %4 = arith.truncf %2 : vector<8x256xf32> to vector<8x256xbf16>
    %c0_3 = arith.constant 0 : index
    %c0_4 = arith.constant 0 : index
    %5 = vector.load %arg3[%c0_3, %c0_4] : memref<256x256xbf16, #tpu.memory_space<vmem>>, vector<256x256xbf16>
    %cst = arith.constant dense<0.000000e+00> : vector<8x256xf32>
    %6 = tpu.matmul %4, %5, %cst {dimension_numbers = #tpu.dot_dimension_numbers<[1], [0], [0], [1], [0, 0, 1, 1], [], []>} : vector<8x256xbf16>, vector<256x256xbf16>, vector<8x256xf32> -> vector<8x256xf32>
    %c0_5 = arith.constant 0 : index
    %c0_6 = arith.constant 0 : index
    %7 = vector.load %arg7[%c0_5, %c0_6] : memref<1x256xf32, #tpu.memory_space<vmem>>, vector<1x256xf32>
    %8 = vector.broadcast %7 : vector<1x256xf32> to vector<8x256xf32>
    %9 = arith.addf %6, %8 : vector<8x256xf32>
    %c0_7 = arith.constant 0 : index
    %c0_8 = arith.constant 0 : index
    %10 = vector.load %arg4[%c0_7, %c0_8] : memref<256x256xbf16, #tpu.memory_space<vmem>>, vector<256x256xbf16>
    %cst_9 = arith.constant dense<0.000000e+00> : vector<8x256xf32>
    %11 = tpu.matmul %4, %10, %cst_9 {dimension_numbers = #tpu.dot_dimension_numbers<[1], [0], [0], [1], [0, 0, 1, 1], [], []>} : vector<8x256xbf16>, vector<256x256xbf16>, vector<8x256xf32> -> vector<8x256xf32>
    %c0_10 = arith.constant 0 : index
    %c0_11 = arith.constant 0 : index
    %12 = vector.load %arg8[%c0_10, %c0_11] : memref<1x256xf32, #tpu.memory_space<vmem>>, vector<1x256xf32>
    %13 = vector.broadcast %12 : vector<1x256xf32> to vector<8x256xf32>
    %14 = arith.addf %11, %13 : vector<8x256xf32>
    %c0_12 = arith.constant 0 : index
    %c0_13 = arith.constant 0 : index
    %15 = vector.load %arg5[%c0_12, %c0_13] : memref<256x256xbf16, #tpu.memory_space<vmem>>, vector<256x256xbf16>
    %cst_14 = arith.constant dense<0.000000e+00> : vector<8x256xf32>
    %16 = tpu.matmul %3, %15, %cst_14 {dimension_numbers = #tpu.dot_dimension_numbers<[1], [0], [0], [1], [0, 0, 1, 1], [], []>} : vector<8x256xbf16>, vector<256x256xbf16>, vector<8x256xf32> -> vector<8x256xf32>
    %c0_15 = arith.constant 0 : index
    %c0_16 = arith.constant 0 : index
    %17 = vector.load %arg9[%c0_15, %c0_16] : memref<1x256xf32, #tpu.memory_space<vmem>>, vector<1x256xf32>
    %18 = vector.broadcast %17 : vector<1x256xf32> to vector<8x256xf32>
    %19 = arith.addf %16, %18 : vector<8x256xf32>
    %20 = arith.truncf %9 : vector<8x256xf32> to vector<8x256xbf16>
    %21 = vector.extract_strided_slice %20 {offsets = [0, 0], sizes = [8, 32], strides = [1, 1]} : vector<8x256xbf16> to vector<8x32xbf16>
    %22 = vector.shape_cast %21 : vector<8x32xbf16> to vector<1x8x32xbf16>
    %23 = vector.extract_strided_slice %20 {offsets = [0, 32], sizes = [8, 32], strides = [1, 1]} : vector<8x256xbf16> to vector<8x32xbf16>
    %24 = vector.shape_cast %23 : vector<8x32xbf16> to vector<1x8x32xbf16>
    %25 = vector.extract_strided_slice %20 {offsets = [0, 64], sizes = [8, 32], strides = [1, 1]} : vector<8x256xbf16> to vector<8x32xbf16>
    %26 = vector.shape_cast %25 : vector<8x32xbf16> to vector<1x8x32xbf16>
    %27 = vector.extract_strided_slice %20 {offsets = [0, 96], sizes = [8, 32], strides = [1, 1]} : vector<8x256xbf16> to vector<8x32xbf16>
    %28 = vector.shape_cast %27 : vector<8x32xbf16> to vector<1x8x32xbf16>
    %29 = vector.extract_strided_slice %20 {offsets = [0, 128], sizes = [8, 32], strides = [1, 1]} : vector<8x256xbf16> to vector<8x32xbf16>
    %30 = vector.shape_cast %29 : vector<8x32xbf16> to vector<1x8x32xbf16>
    %31 = vector.extract_strided_slice %20 {offsets = [0, 160], sizes = [8, 32], strides = [1, 1]} : vector<8x256xbf16> to vector<8x32xbf16>
    %32 = vector.shape_cast %31 : vector<8x32xbf16> to vector<1x8x32xbf16>
    %33 = vector.extract_strided_slice %20 {offsets = [0, 192], sizes = [8, 32], strides = [1, 1]} : vector<8x256xbf16> to vector<8x32xbf16>
    %34 = vector.shape_cast %33 : vector<8x32xbf16> to vector<1x8x32xbf16>
    %35 = vector.extract_strided_slice %20 {offsets = [0, 224], sizes = [8, 32], strides = [1, 1]} : vector<8x256xbf16> to vector<8x32xbf16>
    %36 = vector.shape_cast %35 : vector<8x32xbf16> to vector<1x8x32xbf16>
    %37 = tpu.concatenate %22, %24, %26, %28, %30, %32, %34, %36 in 0 : vector<1x8x32xbf16>, vector<1x8x32xbf16>, vector<1x8x32xbf16>, vector<1x8x32xbf16>, vector<1x8x32xbf16>, vector<1x8x32xbf16>, vector<1x8x32xbf16>, vector<1x8x32xbf16> -> vector<8x8x32xbf16>
    %38 = arith.truncf %14 : vector<8x256xf32> to vector<8x256xbf16>
    %39 = vector.extract_strided_slice %38 {offsets = [0, 0], sizes = [8, 32], strides = [1, 1]} : vector<8x256xbf16> to vector<8x32xbf16>
    %40 = vector.shape_cast %39 : vector<8x32xbf16> to vector<1x8x32xbf16>
    %41 = vector.extract_strided_slice %38 {offsets = [0, 32], sizes = [8, 32], strides = [1, 1]} : vector<8x256xbf16> to vector<8x32xbf16>
    %42 = vector.shape_cast %41 : vector<8x32xbf16> to vector<1x8x32xbf16>
    %43 = vector.extract_strided_slice %38 {offsets = [0, 64], sizes = [8, 32], strides = [1, 1]} : vector<8x256xbf16> to vector<8x32xbf16>
    %44 = vector.shape_cast %43 : vector<8x32xbf16> to vector<1x8x32xbf16>
    %45 = vector.extract_strided_slice %38 {offsets = [0, 96], sizes = [8, 32], strides = [1, 1]} : vector<8x256xbf16> to vector<8x32xbf16>
    %46 = vector.shape_cast %45 : vector<8x32xbf16> to vector<1x8x32xbf16>
    %47 = vector.extract_strided_slice %38 {offsets = [0, 128], sizes = [8, 32], strides = [1, 1]} : vector<8x256xbf16> to vector<8x32xbf16>
    %48 = vector.shape_cast %47 : vector<8x32xbf16> to vector<1x8x32xbf16>
    %49 = vector.extract_strided_slice %38 {offsets = [0, 160], sizes = [8, 32], strides = [1, 1]} : vector<8x256xbf16> to vector<8x32xbf16>
    %50 = vector.shape_cast %49 : vector<8x32xbf16> to vector<1x8x32xbf16>
    %51 = vector.extract_strided_slice %38 {offsets = [0, 192], sizes = [8, 32], strides = [1, 1]} : vector<8x256xbf16> to vector<8x32xbf16>
    %52 = vector.shape_cast %51 : vector<8x32xbf16> to vector<1x8x32xbf16>
    %53 = vector.extract_strided_slice %38 {offsets = [0, 224], sizes = [8, 32], strides = [1, 1]} : vector<8x256xbf16> to vector<8x32xbf16>
    %54 = vector.shape_cast %53 : vector<8x32xbf16> to vector<1x8x32xbf16>
    %55 = tpu.concatenate %40, %42, %44, %46, %48, %50, %52, %54 in 0 : vector<1x8x32xbf16>, vector<1x8x32xbf16>, vector<1x8x32xbf16>, vector<1x8x32xbf16>, vector<1x8x32xbf16>, vector<1x8x32xbf16>, vector<1x8x32xbf16>, vector<1x8x32xbf16> -> vector<8x8x32xbf16>
    %56 = arith.truncf %19 : vector<8x256xf32> to vector<8x256xbf16>
    %57 = vector.extract_strided_slice %56 {offsets = [0, 0], sizes = [8, 32], strides = [1, 1]} : vector<8x256xbf16> to vector<8x32xbf16>
    %58 = vector.shape_cast %57 : vector<8x32xbf16> to vector<1x8x32xbf16>
    %59 = vector.extract_strided_slice %56 {offsets = [0, 32], sizes = [8, 32], strides = [1, 1]} : vector<8x256xbf16> to vector<8x32xbf16>
    %60 = vector.shape_cast %59 : vector<8x32xbf16> to vector<1x8x32xbf16>
    %61 = vector.extract_strided_slice %56 {offsets = [0, 64], sizes = [8, 32], strides = [1, 1]} : vector<8x256xbf16> to vector<8x32xbf16>
    %62 = vector.shape_cast %61 : vector<8x32xbf16> to vector<1x8x32xbf16>
    %63 = vector.extract_strided_slice %56 {offsets = [0, 96], sizes = [8, 32], strides = [1, 1]} : vector<8x256xbf16> to vector<8x32xbf16>
    %64 = vector.shape_cast %63 : vector<8x32xbf16> to vector<1x8x32xbf16>
    %65 = vector.extract_strided_slice %56 {offsets = [0, 128], sizes = [8, 32], strides = [1, 1]} : vector<8x256xbf16> to vector<8x32xbf16>
    %66 = vector.shape_cast %65 : vector<8x32xbf16> to vector<1x8x32xbf16>
    %67 = vector.extract_strided_slice %56 {offsets = [0, 160], sizes = [8, 32], strides = [1, 1]} : vector<8x256xbf16> to vector<8x32xbf16>
    %68 = vector.shape_cast %67 : vector<8x32xbf16> to vector<1x8x32xbf16>
    %69 = vector.extract_strided_slice %56 {offsets = [0, 192], sizes = [8, 32], strides = [1, 1]} : vector<8x256xbf16> to vector<8x32xbf16>
    %70 = vector.shape_cast %69 : vector<8x32xbf16> to vector<1x8x32xbf16>
    %71 = vector.extract_strided_slice %56 {offsets = [0, 224], sizes = [8, 32], strides = [1, 1]} : vector<8x256xbf16> to vector<8x32xbf16>
    %72 = vector.shape_cast %71 : vector<8x32xbf16> to vector<1x8x32xbf16>
    %73 = tpu.concatenate %58, %60, %62, %64, %66, %68, %70, %72 in 0 : vector<1x8x32xbf16>, vector<1x8x32xbf16>, vector<1x8x32xbf16>, vector<1x8x32xbf16>, vector<1x8x32xbf16>, vector<1x8x32xbf16>, vector<1x8x32xbf16>, vector<1x8x32xbf16> -> vector<8x8x32xbf16>
    "tpu.trace_start"() <{level = 10 : i32, message = "bqd,bkd->bqk"}> : () -> ()
    %cst_17 = arith.constant dense<0.000000e+00> : vector<8x8x8xf32>
    %74 = tpu.matmul %37, %55, %cst_17 {dimension_numbers = #tpu.dot_dimension_numbers<[2], [2], [1], [1], [0, 0, 0, 1, 1, 1], [0], [0]>} : vector<8x8x32xbf16>, vector<8x8x32xbf16>, vector<8x8x8xf32> -> vector<8x8x8xf32>
    "tpu.trace_stop"() : () -> ()
    %cst_18 = arith.constant 0.176776692 : f32
    %75 = vector.broadcast %cst_18 : f32 to vector<8x8x8xf32>
    %76 = arith.mulf %74, %75 : vector<8x8x8xf32>
    %cst_19 = arith.constant dense<0xFF800000> : vector<8x8xf32>
    %77 = vector.multi_reduction <maximumf>, %76, %cst_19 [2] : vector<8x8x8xf32> to vector<8x8xf32>
    %78 = vector.shape_cast %77 : vector<8x8xf32> to vector<8x8x1xf32>
    %79 = vector.broadcast %78 : vector<8x8x1xf32> to vector<8x8x8xf32>
    %80 = arith.subf %76, %79 : vector<8x8x8xf32>
    %81 = math.exp %80 : vector<8x8x8xf32>
    %cst_20 = arith.constant dense<0.000000e+00> : vector<8x8xf32>
    %82 = vector.multi_reduction <add>, %81, %cst_20 [2] : vector<8x8x8xf32> to vector<8x8xf32>
    %83 = vector.shape_cast %82 : vector<8x8xf32> to vector<8x8x1xf32>
    %84 = tpu.reciprocal %83 {approx = true} : vector<8x8x1xf32> -> vector<8x8x1xf32>
    %85 = vector.broadcast %84 : vector<8x8x1xf32> to vector<8x8x8xf32>
    %86 = arith.mulf %81, %85 : vector<8x8x8xf32>
    %87 = arith.truncf %86 : vector<8x8x8xf32> to vector<8x8x8xbf16>
    "tpu.trace_start"() <{level = 10 : i32, message = "bqk,bkd->bqd"}> : () -> ()
    %cst_21 = arith.constant dense<0.000000e+00> : vector<8x8x32xf32>
    %88 = tpu.matmul %87, %73, %cst_21 {dimension_numbers = #tpu.dot_dimension_numbers<[2], [1], [1], [2], [0, 0, 0, 1, 1, 2], [0], [0]>} : vector<8x8x8xbf16>, vector<8x8x32xbf16>, vector<8x8x32xf32> -> vector<8x8x32xf32>
    "tpu.trace_stop"() : () -> ()
    %89 = vector.extract_strided_slice %88 {offsets = [0, 0, 0], sizes = [1, 8, 32], strides = [1, 1, 1]} : vector<8x8x32xf32> to vector<1x8x32xf32>
    %90 = vector.shape_cast %89 : vector<1x8x32xf32> to vector<8x32xf32>
    %91 = vector.extract_strided_slice %88 {offsets = [1, 0, 0], sizes = [1, 8, 32], strides = [1, 1, 1]} : vector<8x8x32xf32> to vector<1x8x32xf32>
    %92 = vector.shape_cast %91 : vector<1x8x32xf32> to vector<8x32xf32>
    %93 = vector.extract_strided_slice %88 {offsets = [2, 0, 0], sizes = [1, 8, 32], strides = [1, 1, 1]} : vector<8x8x32xf32> to vector<1x8x32xf32>
    %94 = vector.shape_cast %93 : vector<1x8x32xf32> to vector<8x32xf32>
    %95 = vector.extract_strided_slice %88 {offsets = [3, 0, 0], sizes = [1, 8, 32], strides = [1, 1, 1]} : vector<8x8x32xf32> to vector<1x8x32xf32>
    %96 = vector.shape_cast %95 : vector<1x8x32xf32> to vector<8x32xf32>
    %97 = vector.extract_strided_slice %88 {offsets = [4, 0, 0], sizes = [1, 8, 32], strides = [1, 1, 1]} : vector<8x8x32xf32> to vector<1x8x32xf32>
    %98 = vector.shape_cast %97 : vector<1x8x32xf32> to vector<8x32xf32>
    %99 = vector.extract_strided_slice %88 {offsets = [5, 0, 0], sizes = [1, 8, 32], strides = [1, 1, 1]} : vector<8x8x32xf32> to vector<1x8x32xf32>
    %100 = vector.shape_cast %99 : vector<1x8x32xf32> to vector<8x32xf32>
    %101 = vector.extract_strided_slice %88 {offsets = [6, 0, 0], sizes = [1, 8, 32], strides = [1, 1, 1]} : vector<8x8x32xf32> to vector<1x8x32xf32>
    %102 = vector.shape_cast %101 : vector<1x8x32xf32> to vector<8x32xf32>
    %103 = vector.extract_strided_slice %88 {offsets = [7, 0, 0], sizes = [1, 8, 32], strides = [1, 1, 1]} : vector<8x8x32xf32> to vector<1x8x32xf32>
    %104 = vector.shape_cast %103 : vector<1x8x32xf32> to vector<8x32xf32>
    %105 = tpu.concatenate %90, %92, %94, %96, %98, %100, %102, %104 in 1 : vector<8x32xf32>, vector<8x32xf32>, vector<8x32xf32>, vector<8x32xf32>, vector<8x32xf32>, vector<8x32xf32>, vector<8x32xf32>, vector<8x32xf32> -> vector<8x256xf32>
    %106 = arith.truncf %105 : vector<8x256xf32> to vector<8x256xbf16>
    %c0_22 = arith.constant 0 : index
    %c0_23 = arith.constant 0 : index
    %107 = vector.load %arg6[%c0_22, %c0_23] : memref<256x256xbf16, #tpu.memory_space<vmem>>, vector<256x256xbf16>
    %cst_24 = arith.constant dense<0.000000e+00> : vector<8x256xf32>
    %108 = tpu.matmul %106, %107, %cst_24 {dimension_numbers = #tpu.dot_dimension_numbers<[1], [0], [0], [1], [0, 0, 1, 1], [], []>} : vector<8x256xbf16>, vector<256x256xbf16>, vector<8x256xf32> -> vector<8x256xf32>
    %c0_25 = arith.constant 0 : index
    %c0_26 = arith.constant 0 : index
    %109 = vector.load %arg10[%c0_25, %c0_26] : memref<1x256xf32, #tpu.memory_space<vmem>>, vector<1x256xf32>
    %110 = vector.broadcast %109 : vector<1x256xf32> to vector<8x256xf32>
    %111 = arith.addf %108, %110 : vector<8x256xf32>
    %112 = arith.addf %111, %0 : vector<8x256xf32>
    %cst_27 = arith.constant dense<0.000000e+00> : vector<8xf32>
    %113 = vector.multi_reduction <add>, %112, %cst_27 [1] : vector<8x256xf32> to vector<8xf32>
    %114 = vector.shape_cast %113 : vector<8xf32> to vector<8x1xf32>
    %cst_28 = arith.constant 3.906250e-03 : f32
    %115 = vector.broadcast %cst_28 : f32 to vector<8x1xf32>
    %116 = arith.mulf %114, %115 : vector<8x1xf32>
    %117 = vector.broadcast %116 : vector<8x1xf32> to vector<8x256xf32>
    %118 = arith.subf %112, %117 : vector<8x256xf32>
    %119 = arith.mulf %118, %118 : vector<8x256xf32>
    %cst_29 = arith.constant dense<0.000000e+00> : vector<8xf32>
    %120 = vector.multi_reduction <add>, %119, %cst_29 [1] : vector<8x256xf32> to vector<8xf32>
    %121 = vector.shape_cast %120 : vector<8xf32> to vector<8x1xf32>
    %cst_30 = arith.constant 3.906250e-03 : f32
    %122 = vector.broadcast %cst_30 : f32 to vector<8x1xf32>
    %123 = arith.mulf %121, %122 : vector<8x1xf32>
    %cst_31 = arith.constant 9.99999974E-6 : f32
    %124 = vector.broadcast %cst_31 : f32 to vector<8x1xf32>
    %125 = arith.addf %123, %124 : vector<8x1xf32>
    %126 = math.rsqrt %125 : vector<8x1xf32>
    %c0_32 = arith.constant 0 : index
    %c0_33 = arith.constant 0 : index
    %127 = vector.load %arg11[%c0_32, %c0_33] : memref<1x256xf32, #tpu.memory_space<vmem>>, vector<1x256xf32>
    %128 = vector.broadcast %127 : vector<1x256xf32> to vector<8x256xf32>
    %129 = arith.mulf %128, %118 : vector<8x256xf32>
    %130 = vector.broadcast %126 : vector<8x1xf32> to vector<8x256xf32>
    %131 = arith.mulf %129, %130 : vector<8x256xf32>
    %c0_34 = arith.constant 0 : index
    %c0_35 = arith.constant 0 : index
    %132 = vector.load %arg12[%c0_34, %c0_35] : memref<1x256xf32, #tpu.memory_space<vmem>>, vector<1x256xf32>
    %133 = vector.broadcast %132 : vector<1x256xf32> to vector<8x256xf32>
    %134 = arith.addf %131, %133 : vector<8x256xf32>
    %c0_36 = arith.constant 0 : index
    %c0_37 = arith.constant 0 : index
    %135 = vector.load %arg13[%c0_36, %c0_37] : memref<8x256xf32, #tpu.memory_space<vmem>>, vector<8x256xf32>
    tpu.vector_store %arg13[%c0_36, %c0_37], %134 {strides = array<i32>} : memref<8x256xf32, #tpu.memory_space<vmem>>, vector<8x256xf32>,
    return
  }
  func.func @transform_0(%arg0: i32) -> (i32, i32) {
    %c0_i32 = arith.constant 0 : i32
    %c0_i32_0 = arith.constant 0 : i32
    return %arg0, %c0_i32 : i32, i32
  }
  func.func @transform_1(%arg0: i32) -> (i32, i32) {
    %c0_i32 = arith.constant 0 : i32
    %c0_i32_0 = arith.constant 0 : i32
    return %arg0, %c0_i32 : i32, i32
  }
  func.func @transform_2(%arg0: i32) -> (i32, i32) {
    %c0_i32 = arith.constant 0 : i32
    %c0_i32_0 = arith.constant 0 : i32
    %c0_i32_1 = arith.constant 0 : i32
    return %c0_i32, %c0_i32_0 : i32, i32
  }
  func.func @transform_3(%arg0: i32) -> (i32, i32) {
    %c0_i32 = arith.constant 0 : i32
    %c0_i32_0 = arith.constant 0 : i32
    %c0_i32_1 = arith.constant 0 : i32
    return %c0_i32, %c0_i32_0 : i32, i32
  }
  func.func @transform_4(%arg0: i32) -> (i32, i32) {
    %c0_i32 = arith.constant 0 : i32
    %c0_i32_0 = arith.constant 0 : i32
    %c0_i32_1 = arith.constant 0 : i32
    return %c0_i32, %c0_i32_0 : i32, i32
  }
  func.func @transform_5(%arg0: i32) -> (i32, i32) {
    %c0_i32 = arith.constant 0 : i32
    %c0_i32_0 = arith.constant 0 : i32
    %c0_i32_1 = arith.constant 0 : i32
    return %c0_i32, %c0_i32_0 : i32, i32
  }
  func.func @transform_6(%arg0: i32) -> (i32, i32) {
    %c0_i32 = arith.constant 0 : i32
    %c0_i32_0 = arith.constant 0 : i32
    %c0_i32_1 = arith.constant 0 : i32
    return %c0_i32, %c0_i32_0 : i32, i32
  }
  func.func @transform_7(%arg0: i32) -> (i32, i32) {
    %c0_i32 = arith.constant 0 : i32
    %c0_i32_0 = arith.constant 0 : i32
    %c0_i32_1 = arith.constant 0 : i32
    return %c0_i32, %c0_i32_0 : i32, i32
  }
  func.func @transform_8(%arg0: i32) -> (i32, i32) {
    %c0_i32 = arith.constant 0 : i32
    %c0_i32_0 = arith.constant 0 : i32
    %c0_i32_1 = arith.constant 0 : i32
    return %c0_i32, %c0_i32_0 : i32, i32
  }
  func.func @transform_9(%arg0: i32) -> (i32, i32) {
    %c0_i32 = arith.constant 0 : i32
    %c0_i32_0 = arith.constant 0 : i32
    %c0_i32_1 = arith.constant 0 : i32
    return %c0_i32, %c0_i32_0 : i32, i32
  }
  func.func @transform_10(%arg0: i32) -> (i32, i32) {
    %c0_i32 = arith.constant 0 : i32
    %c0_i32_0 = arith.constant 0 : i32
    %c0_i32_1 = arith.constant 0 : i32
    return %c0_i32, %c0_i32_0 : i32, i32
  }
  func.func @transform_11(%arg0: i32) -> (i32, i32) {
    %c0_i32 = arith.constant 0 : i32
    %c0_i32_0 = arith.constant 0 : i32
    %c0_i32_1 = arith.constant 0 : i32
    return %c0_i32, %c0_i32_0 : i32, i32
  }
  func.func @transform_12(%arg0: i32) -> (i32, i32) {
    %c0_i32 = arith.constant 0 : i32
    %c0_i32_0 = arith.constant 0 : i32
    return %arg0, %c0_i32 : i32, i32
  }
}

</mosaic_0001>

<bundles_post_ra>
// kernel: tpu_custom_call.1
= control target key start
LH: loop header
LB: loop body
LE: loop exit
PB: predicated region body
PF: predicated region fallthrough
CT: control target
= control target key end

     0   :  { %s4117_s0 = inlined_call_operand.hbm [shape: f32[16,256], index: 0, kind: input, shape index: {}]   ;;  %s4118_s1 = inlined_call_operand.hbm [shape: f32[16,256], index: 1, kind: input, shape index: {}]   ;;  %s4119_s2 = inlined_call_operand.hbm [shape: bf16[256,256], index: 2, kind: input, shape index: {}]   ;;  %s4120_s3 = inlined_call_operand.hbm [shape: bf16[256,256], index: 3, kind: input, shape index: {}]   ;;  %s4121_s4 = inlined_call_operand.hbm [shape: bf16[256,256], index: 4, kind: input, shape index: {}]   ;;  %s4122_s5 = inlined_call_operand.hbm [shape: bf16[256,256], index: 5, kind: input, shape index: {}]   ;;  %s4123_s6 = inlined_call_operand.vmem [shape: f32[1,256], index: 6, kind: input, shape index: {}]   ;;  %s4124_s7 = inlined_call_operand.vmem [shape: f32[1,256], index: 7, kind: input, shape index: {}]   ;;  %s4125_s8 = inlined_call_operand.vmem [shape: f32[1,256], index: 8, kind: input, shape index: {}]   ;;  %s4126_s9 = inlined_call_operand.vmem [shape: f32[1,256], index: 9, kind: input, shape index: {}]   ;;  %s4127_s10 = inlined_call_operand.vmem [shape: f32[1,256], index: 10, kind: input, shape index: {}]   ;;  %s4128_s11 = inlined_call_operand.vmem [shape: f32[1,256], index: 11, kind: input, shape index: {}]   ;;  %s4129_s12 = inlined_call_operand.hbm [shape: f32[16,256], index: 12, kind: output, shape index: {}]  }
   0x1   :  { %4139 = sst [smem:[#allocation25_spill]] %s4119_s2 }
   0x2   :  { %4140 = sst [smem:[#allocation26_spill]] %s4120_s3 }
   0x3   :  { %4141 = sst [smem:[#allocation27_spill]] %s4121_s4 }
   0x4   :  { %4142 = sst [smem:[#allocation28_spill]] %s4122_s5 }
   0x5   :  { %17 = vsyncpa [#allocation3], 0 }
   0x6   :  { %19 = vsyncpa [#allocation3 + $0x1], 0 }
   0x7   :  { %20 = vsyncpa [#allocation6], 0 }
   0x8   :  { %22 = vsyncpa [#allocation6 + $0x1], 0 }
   0x9   :  { %23 = vsyncpa [#allocation9], 0 }
   0xa   :  { %24 = vsyncpa [#allocation12], 0 }
   0xb   :  { %25 = vsyncpa [#allocation4], 0 }
   0xc   :  { %27 = vsyncpa [#allocation4 + $0x1], 0  ;;  %s3600_s21 = smov 0   ;;  %s3602_s22 = smov 0  }
   0xd   :  { %s3604_s23 = smov 0   ;;  %s3606_s24 = smov 0  }
   0xe LB: > { %4143 = sst [smem:[#allocation20_spill]] %s3507_s21  ;;  %s3521_s25 = smov [#allocation7]   ;;  %s3519_s24 = sphi %s3606_s24, %s4172_s24   ;;  %s3515_s23 = sphi %s3604_s23, %s4174_s23   ;;  %s3511_s22 = sphi %s3602_s22, %s4176_s22   ;;  %s3507_s21 = sphi %s3600_s21, %s4175_s21  }
   0xf   : > { %4144 = sst [smem:[#allocation21_spill]] %s3515_s23  ;;  %s338_s26 = sshll.u32 %s3521_s25, 4  ;;  %s339_s26 = int_to_ptr.vmem [resolvable:$true] %s338_s26 }
  0x10   : > { %s3621_s27 = sadd.s32 4294967295, %s3519_s24   ;;  %p2637_p0 = scmp.ge.s32.totalorder %s3519_s24, 1 }
  0x11   : > { %p4135_p1 = scmp.eq.s32.totalorder %s3621_s27, 0  ;;  %p326_p2 = scmp.lt.s32.totalorder %s3519_s24, 3 }
  0x12   : > { %s3522_s29 = smov [#allocation8]   ;;  %s3523_s14 = smov [#allocation10]  }
  0x13   : > { %p3626_p3 = pnand %p2637_p0, %p326_p2  ;;  %s351_s30 = sshll.u32 %s3522_s29, 4  ;;  %s3639_s30 = int_to_ptr.vmem [resolvable:$true] %s351_s30 }
  0x14   : > { %s364_s15 = sshll.u32 %s3523_s14, 4  ;;  %s3290_s16 = scalar_lea.vmem %s339_s26, 4096  ;;  %s3641_s15 = int_to_ptr.vmem [resolvable:$true] %s364_s15 }
  0x15   : > { %s4145_s28 = scalar_select %p3626_p3, 1, 0 }
  0x16   : > { %p2959_p5 = pneg %p3626_p3  ;;  %p3291_p8 = scmp.ne.s32.totalorder %s339_s26, %s3290_s16 }
  0x17   : > { %p3298_p11 = scmp.lt.s32.totalorder %s339_s26, %s339_s26  ;;  %p3299_p12 = scmp.lt.s32.totalorder %s3290_s16, %s3290_s16 }
  0x18   : > { %p3635_p6 = pnand %p2959_p5, %p4135_p1 }
  0x19   : > { %p3300_p13 = por %p3299_p12, %p3298_p11 }
  0x1a   : > { %p3281_p7 = pneg %p3635_p6 }
  0x1c   : > { %p3293_p9 = pnand %p3291_p8, %p3281_p7 }
  0x1e   : > { %p3294_p10 = pneg %p3293_p9 }
  0x20   : > { %p3301_p0 = pnand %p3300_p13, %p3294_p10 }
  0x22   : > { %3304 = shalt.err (!%p3301_p0)
}
  0x23   : > { %s3524_s17 = smov 128   ;;  %s3525_s18 = smov 8  }
  0x24   : > { %s4147_s2 = sld [smem:[#allocation25_spill]]  ;;  %s3316_s25 = scalar_lea.vmem %s3639_s30, 4096 }
  0x25   : > { %p3317_p2 = scmp.ne.s32.totalorder %s3639_s30, %s3316_s25  ;;  %p3324_p9 = scmp.lt.s32.totalorder %s3639_s30, %s3639_s30 }
  0x26   : > { %p3325_p10 = scmp.lt.s32.totalorder %s3316_s25, %s3316_s25 }
  0x27   : > { %p3319_p5 = pnand %p3317_p2, %p3281_p7 }
  0x28   : > { %p3326_p11 = por %p3325_p10, %p3324_p9 }
  0x29   : > { %p3320_p8 = pneg %p3319_p5 }
  0x2a   : > { %2962 = dma.hbm_to_vmem [thread:$0]  (!%p3635_p6), %s4147_s2, 4096, %s339_s26, [#allocation6], %s3524_s17, %s3524_s17, %s3525_s18  }
  0x2b   : > { %p3327_p12 = pnand %p3326_p11, %p3320_p8 }
  0x2d   : > { %3330 = shalt.err (!%p3327_p12)
}
  0x2e   : > { %s4148_s3 = sld [smem:[#allocation26_spill]]  ;;  %s3342_s14 = scalar_lea.vmem %s3641_s15, 4096 }
  0x2f   : > { %p3343_p13 = scmp.ne.s32.totalorder %s3641_s15, %s3342_s14  ;;  %p3350_p5 = scmp.lt.s32.totalorder %s3641_s15, %s3641_s15 }
  0x30   : > { %p3351_p8 = scmp.lt.s32.totalorder %s3342_s14, %s3342_s14 }
  0x31   : > { %p3345_p0 = pnand %p3343_p13, %p3281_p7 }
  0x32   : > { %p3352_p9 = por %p3351_p8, %p3350_p5 }
  0x33   : > { %p3346_p2 = pneg %p3345_p0 }
  0x34   : > { %2965 = dma.hbm_to_vmem [thread:$0]  (!%p3635_p6), %s4148_s3, 4096, %s3639_s30, [#allocation9], %s3524_s17, %s3524_s17, %s3525_s18  }
  0x35   : > { %p3353_p10 = pnand %p3352_p9, %p3346_p2 }
  0x37   : > { %3356 = shalt.err (!%p3353_p10)
}
  0x38   : > { %s4149_s4 = sld [smem:[#allocation27_spill]]  ;;  %s3526_s19 = smov [#allocation11]  }
  0x39   : > { %s377_s20 = sshll.u32 %s3526_s19, 4  ;;  %s378_s20 = int_to_ptr.vmem [resolvable:$true] %s377_s20 }
  0x3a   : > { %s3368_s25 = scalar_lea.vmem %s378_s20, 4096  ;;  %p3376_p0 = scmp.lt.s32.totalorder %s378_s20, %s378_s20 }
  0x3b   : > { %p3369_p11 = scmp.ne.s32.totalorder %s378_s20, %s3368_s25  ;;  %p3377_p2 = scmp.lt.s32.totalorder %s3368_s25, %s3368_s25 }
  0x3d   : > { %p3371_p12 = pnand %p3369_p11, %p3281_p7  ;;  %p3378_p5 = por %p3377_p2, %p3376_p0 }
  0x3e   : > { %2968 = dma.hbm_to_vmem [thread:$0]  (!%p3635_p6), %s4149_s4, 4096, %s3641_s15, [#allocation9], %s3524_s17, %s3524_s17, %s3525_s18  }
  0x3f   : > { %p3372_p13 = pneg %p3371_p12 }
  0x41   : > { %p3379_p8 = pnand %p3378_p5, %p3372_p13 }
  0x43   : > { %3382 = shalt.err (!%p3379_p8)
}
  0x44   : > { %s4150_s5 = sld [smem:[#allocation28_spill]]  ;;  %s2636_s13 = sadd.s32 4294967294, %s3519_s24  }
  0x45   : > { %s3701_s26 = sadd.s32 1, %s3519_s24   ;;  %s40_s16 = sadd.s32 1, %s3515_s23 }
  0x46   : > { %4151 = sst [smem:[#allocation22_spill]] %s3701_s26  ;;  %s37_s14 = ssub.s32 %s3519_s24, %s3701_s26 }
  0x47   : > { %p38_p7 = scmp.eq.s32.totalorder %s37_s14, 0  ;;  %p47_p9 = scmp.ne.s32.totalorder %s3515_s23, %s3511_s22 }
  0x48   : > { %p48_p10 = scmp.eq.s32.totalorder %s3519_s24, 0  ;;  %p53_p11 = scmp.ne.s32.totalorder %s3511_s22, %s3507_s21 }
  0x49   : > { %s3712_s30 = scalar_select %p38_p7, %s3515_s23, %s40_s16  }
  0x4a   : > { %2971 = dma.hbm_to_vmem [thread:$0]  (!%p3635_p6), %s4150_s5, 4096, %s378_s20, [#allocation12], %s3524_s17, %s3524_s17, %s3525_s18  }
  0x4b   : > { %4152 = sst [smem:[#allocation23_spill]] %s3712_s30  ;;  %p3714_p12 = por %p48_p10, %p47_p9 }
  0x4c   : > { %p3720_p6 = por %p4135_p1, %p53_p11  ;;  %p313_p13 = scmp.eq.s32.totalorder %s3621_s27, 1 }
  0x4d   : > { %p319_p0 = scmp.eq.s32.totalorder %s2636_s13, 1  ;;  %p2987_p2 = scmp.lt.s32.totalorder %s3519_s24, 2 }
  0x4e   : > { %s4154_s17 = scalar_select %p3720_p6, 1, 0 }
  0x4f   : > { %s409_s18 = sand.u32 1, %s3515_s23   ;;  %p3727_p5 = por %p313_p13, %p47_p9 }
  0x50   : > { %p3731_p8 = por %p319_p0, %p53_p11  ;;  %s3735_s15 = sshll.u32 %s409_s18, 4 }
  0x51   : > { %s4155_s20 = scalar_select %p3727_p5, 1, 0 }
  0x52   : > { %s4156_s25 = scalar_select %p3731_p8, 1, 0 }
  0x53   : > { %s2806_s29 = sshll.u32 %s3519_s24, 8  ;;  %s413_s13 = scalar_lea.vmem [#allocation2], %s3735_s15 }
  0x54   : > { %4157 = sst [smem:[#allocation24_spill]] %s4156_s25  ;;  %s3741_s2 = scalar_lea.hbm %s4117_s0, %s2806_s29 }
  0x55   : > { %s421_s3 = sshll.u32 %s413_s13, 4  ;;  %p3748_p7 = pnand %p2987_p2, %p3714_p12  ;;  %s3744_s3 = int_to_ptr.vmem [resolvable:$true] %s421_s3 }
  0x56   : > { %s3755_s14 = scalar_lea.hbm %s4118_s1, %s2806_s29  ;;  %s428_s16 = sand.u32 1, %s3519_s24  }
  0x57   : > { %s410_s23 = scalar_lea.sflag [#allocation3], %s409_s18  ;;  %s3383_s26 = scalar_lea.hbm %s3741_s2, 256 }
  0x58   : > { %p3384_p9 = scmp.ne.s32.totalorder %s3741_s2, %s3383_s26  ;;  %p3385_p10 = pneg %p3748_p7 }
  0x59   : > { %s3388_s25 = scalar_lea.hbm %s4117_s0, 512  ;;  %p3389_p13 = scmp.lt.s32.totalorder %s3741_s2, %s4117_s0 }
  0x5a   : > { %p3386_p11 = pnand %p3385_p10, %p3384_p9  ;;  %p3390_p0 = scmp.lt.s32.totalorder %s3388_s25, %s3383_s26 }
  0x5c   : > { %p3387_p12 = pneg %p3386_p11  ;;  %p3391_p2 = por %p3390_p0, %p3389_p13 }
  0x5e   : > { %p3392_p4 = pnand %p3391_p2, %p3387_p12 }
  0x60   : > { %3395 = shalt.err (!%p3392_p4)
}
  0x61   : > { %s3396_s30 = scalar_lea.vmem %s3744_s3, 256  ;;  %s3527_s18 = smov [#allocation2]  }
  0x62   : > { %p3397_p1 = scmp.ne.s32.totalorder %s3744_s3, %s3396_s30  ;;  %s3401_s29 = sshll.u32 %s3527_s18, 4  ;;  %s3402_s29 = int_to_ptr.vmem [resolvable:$false] %s3401_s29 }
  0x63   : > { %s3403_s19 = scalar_lea.vmem %s3402_s29, 512  ;;  %p3404_p8 = scmp.lt.s32.totalorder %s3744_s3, %s3402_s29 }
  0x64   : > { %p3399_p9 = pnand %p3397_p1, %p3385_p10  ;;  %p3405_p5 = scmp.lt.s32.totalorder %s3403_s19, %s3396_s30 }
  0x66   : > { %p3400_p11 = pneg %p3399_p9  ;;  %p3406_p6 = por %p3405_p5, %p3404_p8 }
  0x68   : > { %p3407_p13 = pnand %p3406_p6, %p3400_p11 }
  0x6a   : > { %3410 = shalt.err (!%p3407_p13)
}
  0x6b   : > { %2975 = dma.hbm_to_vmem [thread:$0]  (!%p3748_p7), %s3741_s2, 256, %s3744_s3, %s410_s23  }
  0x6c   : > { %s432_s21 = scalar_lea.vmem [#allocation5], %s3735_s15  ;;  %s429_s25 = scalar_lea.sflag [#allocation6], %s428_s16 }
  0x6d   : > { %s440_s26 = sshll.u32 %s432_s21, 4  ;;  %s3411_s13 = scalar_lea.hbm %s3755_s14, 256  ;;  %s441_s26 = int_to_ptr.vmem [resolvable:$true] %s440_s26 }
  0x6e   : > { %p3412_p1 = scmp.ne.s32.totalorder %s3755_s14, %s3411_s13  ;;  %s3416_s18 = scalar_lea.hbm %s4118_s1, 512 }
  0x6f   : > { %p3417_p5 = scmp.lt.s32.totalorder %s3755_s14, %s4118_s1  ;;  %p3418_p8 = scmp.lt.s32.totalorder %s3416_s18, %s3411_s13 }
  0x70   : > { %p3414_p4 = pnand %p3412_p1, %p3385_p10 }
  0x71   : > { %p3419_p12 = por %p3418_p8, %p3417_p5 }
  0x72   : > { %p3415_p6 = pneg %p3414_p4 }
  0x74   : > { %p3420_p0 = pnand %p3419_p12, %p3415_p6 }
  0x76   : > { %3423 = shalt.err (!%p3420_p0)
}
  0x77   : > { %s3424_s2 = scalar_lea.vmem %s441_s26, 256  ;;  %s3528_s3 = smov [#allocation5]  }
  0x78   : > { %p3425_p2 = scmp.ne.s32.totalorder %s441_s26, %s3424_s2  ;;  %s3429_s23 = sshll.u32 %s3528_s3, 4  ;;  %s3430_s23 = int_to_ptr.vmem [resolvable:$false] %s3429_s23 }
  0x79   : > { %s3431_s15 = scalar_lea.vmem %s3430_s23, 512  ;;  %p3432_p13 = scmp.lt.s32.totalorder %s441_s26, %s3430_s23 }
  0x7a   : > { %p3427_p9 = pnand %p3425_p2, %p3385_p10  ;;  %p3433_p1 = scmp.lt.s32.totalorder %s3431_s15, %s3424_s2 }
  0x7c   : > { %p3428_p11 = pneg %p3427_p9  ;;  %p3434_p4 = por %p3433_p1, %p3432_p13 }
  0x7e   : > { %p3435_p3 = pnand %p3434_p4, %p3428_p11 }
  0x80   : > { %3438 = shalt.err (!%p3435_p3)
}
  0x81   : > { %2978 = dma.hbm_to_vmem [thread:$0]  (!%p3748_p7), %s3755_s14, 256, %s441_s26, %s429_s25  }
  0x82   : > { %p4159_p6 = scmp.ne.s32.totalorder %s4145_s28, 0 }
  0x83   : > { %s3806_s16 = sand.u32 (!%p4159_p6), 1, %s3511_s22   ;;  %p4160_p3 = scmp.ne.s32.totalorder (!%p4159_p6), %s4154_s17, 0 }
  0x84   : > { %449 = sbr.rel (%p4159_p6) target bundleno = 1969 (0x7b1), region = 68  ;;  %s3809_s21 = sshll.u32 (!%p4159_p6), %s3806_s16, 4 }
  0x85   : > { %s452_s13 = scalar_lea.sflag (!%p4159_p6), [#allocation3], %s3806_s16  ;;  %s3813_s5 = scalar_lea.vmem (!%p4159_p6), [#allocation2], %s3809_s21 }
  0x89   : > { %3482 = dma.done.wait (%p4160_p3), %s452_s13, 256  }
  0x8a   : > { %3484 = vsyncadd (%p4160_p3), %s452_s13, 4294967040  ;;  %s460_s4 = sand.u32 1, %s3621_s27   ;;  %s464_s14 = scalar_lea.vmem [#allocation5], %s3809_s21 }
  0x8b   : > { %s461_s28 = scalar_lea.sflag [#allocation6], %s460_s4 }
  0x8c   : > { %3486 = dma.done.wait (%p4160_p3), %s461_s28, 256  }
  0x8d   : > { %3488 = vsyncadd (%p4160_p3), %s461_s28, 4294967040  ;;  %p4161_p7 = scmp.eq.s32.totalorder %s3621_s27, 0 }
  0x8f   : > { %3490 = dma.done.wait (%p4161_p7), [#allocation6], 4096   ;;  %p4162_p10 = pmov %p4161_p7 }
  0x90   : > { %p4163_p5 = pmov %p4161_p7 }
  0x91   : > { %3492 = vsyncadd (%p4162_p10), [#allocation6], 4294963200 }
  0x92   : > { %3494 = dma.done.wait (%p4163_p5), [#allocation9], 8192   ;;  %p4164_p8 = pmov %p4163_p5 }
  0x93   : > { %p4165_p12 = pmov %p4163_p5 }
  0x94   : > { %3496 = vsyncadd (%p4164_p8), [#allocation9], 4294959104 }
  0x95   : > { %3498 = dma.done.wait (%p4165_p12), [#allocation12], 4096   ;;  %p4166_p0 = pmov %p4163_p5 }
  0x96   : > { %v3051_v0 = vld [vmem:[#allocation8 + $0x74] ss:$8 sps:$4 sm:$0xff]   ;;  %v3053_v1 = vld [vmem:[#allocation8 + $0x70] ss:$8 sps:$4 sm:$0xff]   ;;  %v3057_v4 = vld [vmem:[#allocation8 + $0x64] ss:$8 sps:$4 sm:$0xff]  }
  0x97   : > { %3500 = vsyncadd (%p4166_p0), [#allocation12], 4294963200  ;;  %986 = vmatprep.subr.bf16.mxu1 %v3051_v0  ;;  %v3054_v2 = vld [vmem:[#allocation7 + $0x74] ss:$8 sps:$4 sm:$0xff]   ;;  %v3056_v3 = vld [vmem:[#allocation7 + $0x70] ss:$8 sps:$4 sm:$0xff]  }
  0x98   : > { %987 = vmatpush1.bf16.msra.mxu1 %v3053_v1  ;;  %v3059_v5 = vld [vmem:[#allocation8 + $0x60] ss:$8 sps:$4 sm:$0xff]   ;;  %741 = vmatprep.subr.bf16.mxu0 %v3054_v2  ;;  %v3060_v6 = vld [vmem:[#allocation7 + $0x64] ss:$8 sps:$4 sm:$0xff]   ;;  %v3063_v8 = vld [vmem:[#allocation8 + $0x54] ss:$8 sps:$4 sm:$0xff]  }
  0x99   : > { %742 = vmatpush1.bf16.msra.mxu0 %v3056_v3  ;;  %988 = vmatprep.subr.bf16.mxu1 %v3057_v4  ;;  %v3062_v7 = vld [vmem:[#allocation7 + $0x60] ss:$8 sps:$4 sm:$0xff]   ;;  %v3065_v9 = vld [vmem:[#allocation8 + $0x50] ss:$8 sps:$4 sm:$0xff]   ;;  %v3066_v10 = vld [vmem:[#allocation7 + $0x54] ss:$8 sps:$4 sm:$0xff]  }
  0x9a   : > { %743 = vmatprep.subr.bf16.mxu0 %v3060_v6  ;;  %v3069_v11 = vld [vmem:[#allocation8 + $0x44] ss:$8 sps:$4 sm:$0xff]   ;;  %v3068_v12 = vld [vmem:[#allocation7 + $0x50] ss:$8 sps:$4 sm:$0xff]   ;;  %v3071_v14 = vld [vmem:[#allocation8 + $0x40] ss:$8 sps:$4 sm:$0xff]  }
  0x9b   : > { %v3072_v13 = vld [vmem:[#allocation7 + $0x44] ss:$8 sps:$4 sm:$0xff]   ;;  %v3075_v15 = vld [vmem:[#allocation8 + $0x34] ss:$8 sps:$4 sm:$0xff]   ;;  %v3074_v16 = vld [vmem:[#allocation7 + $0x40] ss:$8 sps:$4 sm:$0xff]  }
  0x9c   : > { %989 = vmatpush1.bf16.msra.mxu1 %v3059_v5  ;;  %v3078_v17 = vld [vmem:[#allocation7 + $0x34] ss:$8 sps:$4 sm:$0xff]   ;;  %v3077_v18 = vld [vmem:[#allocation8 + $0x30] ss:$8 sps:$4 sm:$0xff]   ;;  %v3081_v19 = vld [vmem:[#allocation8 + $0x24] ss:$8 sps:$4 sm:$0xff]  }
  0x9d   : > { %990 = vmatprep.subr.bf16.mxu1 %v3063_v8  ;;  %744 = vmatpush1.bf16.msra.mxu0 %v3062_v7  ;;  %v3080_v20 = vld [vmem:[#allocation7 + $0x30] ss:$8 sps:$4 sm:$0xff]   ;;  %v3084_v21 = vld [vmem:[#allocation7 + $0x24] ss:$8 sps:$4 sm:$0xff]   ;;  %v3083_v22 = vld [vmem:[#allocation8 + $0x20] ss:$8 sps:$4 sm:$0xff]  }
  0x9e   : > { %745 = vmatprep.subr.bf16.mxu0 %v3066_v10  ;;  %v3087_v23 = vld [vmem:[#allocation8 + $0x14] ss:$8 sps:$4 sm:$0xff]   ;;  %v3086_v24 = vld [vmem:[#allocation7 + $0x20] ss:$8 sps:$4 sm:$0xff]   ;;  %v3089_v26 = vld [vmem:[#allocation8 + $0x10] ss:$8 sps:$4 sm:$0xff]  }
  0x9f   : > { %v3090_v25 = vld [vmem:[#allocation7 + $0x14] ss:$8 sps:$4 sm:$0xff]   ;;  %v3093_v27 = vld [vmem:[#allocation8 + $0x4] ss:$8 sps:$4 sm:$0xff]   ;;  %v3092_v28 = vld [vmem:[#allocation7 + $0x10] ss:$8 sps:$4 sm:$0xff]  }
  0xa0   : > { %991 = vmatpush1.bf16.msra.mxu1 %v3065_v9  ;;  %v3096_v29 = vld [vmem:[#allocation7 + $0x4] ss:$8 sps:$4 sm:$0xff]   ;;  %v3095_v30 = vld [vmem:[#allocation8] ss:$8 sps:$4 sm:$0xff]   ;;  %v3099_v31 = vld [vmem:[#allocation8 + $0xf4] ss:$8 sps:$4 sm:$0xff]   ;;  %v571_v9 = vlaneseq }
  0xa1   : > { %992 = vmatprep.subr.bf16.mxu1 %v3069_v11  ;;  %746 = vmatpush1.bf16.msra.mxu0 %v3068_v12  ;;  %v3098_v32 = vld [vmem:[#allocation7] ss:$8 sps:$4 sm:$0xff]   ;;  %v3102_v33 = vld [vmem:[#allocation7 + $0xf4] ss:$8 sps:$4 sm:$0xff]   ;;  %v3101_v34 = vld [vmem:[#allocation8 + $0xf0] ss:$8 sps:$4 sm:$0xff]  }
  0xa2   : > { %747 = vmatprep.subr.bf16.mxu0 %v3072_v13  ;;  %v3105_v35 = vld [vmem:[#allocation8 + $0xe4] ss:$8 sps:$4 sm:$0xff]   ;;  %v3104_v36 = vld [vmem:[#allocation7 + $0xf0] ss:$8 sps:$4 sm:$0xff]   ;;  %v3107_v38 = vld [vmem:[#allocation8 + $0xe0] ss:$8 sps:$4 sm:$0xff]  }
  0xa3   : > { %v3108_v37 = vld [vmem:[#allocation7 + $0xe4] ss:$8 sps:$4 sm:$0xff]   ;;  %v3111_v39 = vld [vmem:[#allocation8 + $0xd4] ss:$8 sps:$4 sm:$0xff]   ;;  %v3110_v40 = vld [vmem:[#allocation7 + $0xe0] ss:$8 sps:$4 sm:$0xff]  }
  0xa4   : > { %993 = vmatpush1.bf16.msra.mxu1 %v3071_v14  ;;  %v3114_v41 = vld [vmem:[#allocation7 + $0xd4] ss:$8 sps:$4 sm:$0xff]   ;;  %v3113_v42 = vld [vmem:[#allocation8 + $0xd0] ss:$8 sps:$4 sm:$0xff]   ;;  %v3117_v43 = vld [vmem:[#allocation8 + $0xc4] ss:$8 sps:$4 sm:$0xff]  }
  0xa5   : > { %994 = vmatprep.subr.bf16.mxu1 %v3075_v15  ;;  %748 = vmatpush1.bf16.msra.mxu0 %v3074_v16  ;;  %v3116_v44 = vld [vmem:[#allocation7 + $0xd0] ss:$8 sps:$4 sm:$0xff]   ;;  %v3120_v45 = vld [vmem:[#allocation7 + $0xc4] ss:$8 sps:$4 sm:$0xff]   ;;  %v3119_v48 = vld [vmem:[#allocation8 + $0xc0] ss:$8 sps:$4 sm:$0xff]  }
  0xa6   : > { %749 = vmatprep.subr.bf16.mxu0 %v3078_v17  ;;  %v3838_v46 = vld [vmem:[%s3813_s5 + $0x8] sm:$0xff]  ;;  %v3844_v63 = vld [vmem:[%s3813_s5] sm:$0xff]  ;;  %v3529_v8 = vmov 0.0   ;;  %vm3530_vm0 = vmmov 0   ;;  %v572_v10 = vshrl.u32 %v571_v9, 7  ;;  %vm1320_vm1 = vcmask 261120  }
  0xa7   : > { %v530_v47 = vld [vmem:[%s464_s14 + $0x8] sm:$0xff]  ;;  %v529_v0 = vld [vmem:[%s464_s14] sm:$0xff]  ;;  %s3531_s18 = smov 64   ;;  %s3532_s29 = smov 96   ;;  %vm1697_vm2 = vcmask 64512   ;;  %vm1797_vm3 = vcmask 1043456  }
  0xa8   : > { %995 = vmatpush1.bf16.msra.mxu1 %v3077_v18  ;;  %v3122_v49 = vld [vmem:[#allocation7 + $0xc0] ss:$8 sps:$4 sm:$0xff]   ;;  %v3123_v50 = vld [vmem:[#allocation8 + $0xb4] ss:$8 sps:$4 sm:$0xff]   ;;  %v532_v51 = vadd.f32 %v530_v47, %v3838_v46  ;;  %v3125_v53 = vld [vmem:[#allocation8 + $0xb0] ss:$8 sps:$4 sm:$0xff]   ;;  %v531_v5 = vadd.f32 %v529_v0, %v3844_v63 }
  0xa9   : > { %996 = vmatprep.subr.bf16.mxu1 %v3081_v19  ;;  %750 = vmatpush1.bf16.msra.mxu0 %v3080_v20  ;;  %v3126_v52 = vld [vmem:[#allocation7 + $0xb4] ss:$8 sps:$4 sm:$0xff]   ;;  %v3129_v55 = vld [vmem:[#allocation8 + $0xa4] ss:$8 sps:$4 sm:$0xff]   ;;  %v3128_v56 = vld [vmem:[#allocation7 + $0xb0] ss:$8 sps:$4 sm:$0xff]  }
  0xaa   : > { %751 = vmatprep.subr.bf16.mxu0 %v3084_v21  ;;  %v536_v54 = vpack.c.bf16 %v532_v51, %v532_v51  ;;  %v3132_v57 = vld [vmem:[#allocation7 + $0xa4] ss:$8 sps:$4 sm:$0xff]   ;;  %v3131_v58 = vld [vmem:[#allocation8 + $0xa0] ss:$8 sps:$4 sm:$0xff]   ;;  %v3135_v59 = vld [vmem:[#allocation8 + $0x94] ss:$8 sps:$4 sm:$0xff]   ;;  %v535_v7 = vpack.c.bf16 %v531_v5, %v531_v5 }
  0xab   : > { %v3134_v60 = vld [vmem:[#allocation7 + $0xa0] ss:$8 sps:$4 sm:$0xff]   ;;  %v3138_v61 = vld [vmem:[#allocation7 + $0x94] ss:$8 sps:$4 sm:$0xff]   ;;  %v3137_v62 = vld [vmem:[#allocation8 + $0x90] ss:$8 sps:$4 sm:$0xff]  }
  0xac   : > { %997 = vmatpush1.bf16.msra.mxu1 %v3083_v22  ;;  %1018 = vmatprep.mubr.bf16.mxu1 %v536_v54  ;;  %v3141_v1 = vld [vmem:[#allocation8 + $0x84] ss:$8 sps:$4 sm:$0xff]   ;;  %v3140_v2 = vld [vmem:[#allocation7 + $0x90] ss:$8 sps:$4 sm:$0xff]   ;;  %v3143_v4 = vld [vmem:[#allocation8 + $0x80] ss:$8 sps:$4 sm:$0xff]  }
  0xad   : > { %998 = vmatprep.subr.bf16.mxu1 %v3087_v23  ;;  %752 = vmatpush1.bf16.msra.mxu0 %v3086_v24  ;;  %v3144_v3 = vld [vmem:[#allocation7 + $0x84] ss:$8 sps:$4 sm:$0xff]   ;;  %v3146_v6 = vld [vmem:[#allocation7 + $0x80] ss:$8 sps:$4 sm:$0xff]   ;;  %v3852_v11 = vsub.s32 0, %v572_v10  ;;  %v3862_v21 = vsub.s32 1, %v572_v10 }
  0xae   : > { %753 = vmatprep.subr.bf16.mxu0 %v3090_v25  ;;  %773 = vmatprep.mubr.bf16.mxu0 %v536_v54  ;;  %v814_v12 = vld [vmem:[%s4124_s7] sm:$0x3]  ;;  %s3533_s19 = smov 32   ;;  %v3159_v47 = vld [vmem:[#allocation10 + $0x30] ss:$8 sps:$4 sm:$0xff]   ;;  %vm2188_vm4 = vcmask 523264  }
  0xaf   : > { %v569_v13 = vld [vmem:[%s4123_s6] sm:$0x3]  ;;  %v819_v14 = vrot.slane %v814_v12, %v3852_v11  ;;  %v3170_v51 = vld [vmem:[#allocation10 + $0x4] ss:$8 sps:$4 sm:$0xff]   ;;  %v3171_v54 = vld [vmem:[#allocation10 + $0xf0] ss:$8 sps:$4 sm:$0xff]  }
  0xb0   : > { %999 = vmatpush1.bf16.msra.mxu1 %v3089_v26  ;;  %v574_v15 = vrot.slane %v569_v13, %v3852_v11  ;;  %v3188_v5 = vld [vmem:[#allocation10 + $0xa4] ss:$8 sps:$4 sm:$0xff]   ;;  %v3186_v9 = vld [vmem:[#allocation10 + $0xa0] ss:$8 sps:$4 sm:$0xff]   ;;  %vm2190_vm5 = vcmask 785408   ;;  %s2808_s14 = sshll.u32 %s3621_s27, 8 }
  0xb1   : > { %1000 = vmatprep.subr.bf16.mxu1 %v3093_v27  ;;  %754 = vmatpush1.bf16.msra.mxu0 %v3092_v28  ;;  %s525_s17 = scalar_lea.vmem [#allocation13], %s3809_s21  ;;  %p4167_p9 = scmp.ne.s32.totalorder %s4155_s20, 0 }
  0xb2   : > { %755 = vmatprep.subr.bf16.mxu0 %v3096_v29  ;;  %v823_v29 = vrot.slane %v814_v12, %v3862_v21  ;;  %v3191_v12 = vld [vmem:[#allocation10 + $0x94] ss:$8 sps:$4 sm:$0xff]   ;;  %s2505_s26 = sshll.u32 %s525_s17, 4  ;;  %s3534_s27 = smov [#allocation13]   ;;  %s2506_s26 = int_to_ptr.vmem [resolvable:$true] %s2505_s26 }
  0xb3   : > { %s3443_s21 = sshll.u32 %s3534_s27, 4  ;;  %s3444_s21 = int_to_ptr.vmem [resolvable:$false] %s3443_s21 }
  0xb4   : > { %1001 = vmatpush1.bf16.msra.mxu1 %v3095_v30  ;;  %v578_v30 = vrot.slane %v569_v13, %v3862_v21  ;;  %v3189_v13 = vld [vmem:[#allocation10 + $0x90] ss:$8 sps:$4 sm:$0xff]   ;;  %s3445_s2 = scalar_lea.vmem %s3444_s21, 512  ;;  %p3446_p1 = scmp.lt.s32.totalorder %s2506_s26, %s3444_s21 }
  0xb5   : > { %1002 = vmatprep.subr.bf16.mxu1 %v3099_v31  ;;  %756 = vmatpush1.bf16.msra.mxu0 %v3098_v32 }
  0xb6   : > { %757 = vmatprep.subr.bf16.mxu0 %v3102_v33 }
  0xb8   : > { %1003 = vmatpush2.bf16.msra.mxu1 %v3101_v34 }
  0xb9   : > { %1004 = vmatprep.subr.bf16.mxu1 %v3105_v35  ;;  %758 = vmatpush2.bf16.msra.mxu0 %v3104_v36  ;;  %v3147_v36 = vld [vmem:[#allocation10 + $0x70] ss:$8 sps:$4 sm:$0xff]  }
  0xba   : > { %759 = vmatprep.subr.bf16.mxu0 %v3108_v37  ;;  %v3149_v37 = vld [vmem:[#allocation10 + $0x74] ss:$8 sps:$4 sm:$0xff]  }
  0xbc   : > { %1005 = vmatpush2.bf16.msra.mxu1 %v3107_v38  ;;  %v534_v38 = vpack.c.bf16 %v3838_v46, %v3838_v46  ;;  %v3162_v46 = vld [vmem:[#allocation10 + $0x20] ss:$8 sps:$4 sm:$0xff]  }
  0xbd   : > { %1006 = vmatprep.subr.bf16.mxu1 %v3111_v39  ;;  %760 = vmatpush2.bf16.msra.mxu0 %v3110_v40  ;;  %v3152_v39 = vld [vmem:[#allocation10 + $0x64] ss:$8 sps:$4 sm:$0xff]   ;;  %v3150_v40 = vld [vmem:[#allocation10 + $0x60] ss:$8 sps:$4 sm:$0xff]  }
  0xbe   : > { %761 = vmatprep.subr.bf16.mxu0 %v3114_v41  ;;  %v3155_v41 = vld [vmem:[#allocation10 + $0x54] ss:$8 sps:$4 sm:$0xff]  }
  0xc0   : > { %1007 = vmatpush2.bf16.msra.mxu1 %v3113_v42  ;;  %v3153_v42 = vld [vmem:[#allocation10 + $0x50] ss:$8 sps:$4 sm:$0xff]  }
  0xc1   : > { %1008 = vmatprep.subr.bf16.mxu1 %v3117_v43  ;;  %762 = vmatpush2.bf16.msra.mxu0 %v3116_v44  ;;  %v3158_v43 = vld [vmem:[#allocation10 + $0x44] ss:$8 sps:$4 sm:$0xff]   ;;  %v3156_v44 = vld [vmem:[#allocation10 + $0x40] ss:$8 sps:$4 sm:$0xff]  }
  0xc2   : > { %763 = vmatprep.subr.bf16.mxu0 %v3120_v45  ;;  %v3161_v45 = vld [vmem:[#allocation10 + $0x34] ss:$8 sps:$4 sm:$0xff]  }
  0xc4   : > { %1009 = vmatpush2.bf16.msra.mxu1 %v3119_v48  ;;  %v3164_v48 = vld [vmem:[#allocation10 + $0x24] ss:$8 sps:$4 sm:$0xff]  }
  0xc5   : > { %1010 = vmatprep.subr.bf16.mxu1 %v3123_v50  ;;  %764 = vmatpush2.bf16.msra.mxu0 %v3122_v49  ;;  %v3167_v49 = vld [vmem:[#allocation10 + $0x14] ss:$8 sps:$4 sm:$0xff]   ;;  %v3165_v50 = vld [vmem:[#allocation10 + $0x10] ss:$8 sps:$4 sm:$0xff]  }
  0xc6   : > { %765 = vmatprep.subr.bf16.mxu0 %v3126_v52  ;;  %v3168_v52 = vld [vmem:[#allocation10] ss:$8 sps:$4 sm:$0xff]  }
  0xc8   : > { %1011 = vmatpush2.bf16.msra.mxu1 %v3125_v53  ;;  %v3173_v53 = vld [vmem:[#allocation10 + $0xf4] ss:$8 sps:$4 sm:$0xff]  }
  0xc9   : > { %1012 = vmatprep.subr.bf16.mxu1 %v3129_v55  ;;  %766 = vmatpush2.bf16.msra.mxu0 %v3128_v56  ;;  %v3176_v55 = vld [vmem:[#allocation10 + $0xe4] ss:$8 sps:$4 sm:$0xff]  }
  0xca   : > { %767 = vmatprep.subr.bf16.mxu0 %v3132_v57  ;;  %v3174_v57 = vld [vmem:[#allocation10 + $0xe0] ss:$8 sps:$4 sm:$0xff]  }
  0xcc   : > { %1013 = vmatpush2.bf16.msra.mxu1 %v3131_v58 }
  0xcd   : > { %1014 = vmatprep.subr.bf16.mxu1 %v3135_v59  ;;  %768 = vmatpush2.bf16.msra.mxu0 %v3134_v60  ;;  %v3179_v59 = vld [vmem:[#allocation10 + $0xd4] ss:$8 sps:$4 sm:$0xff]   ;;  %v3177_v60 = vld [vmem:[#allocation10 + $0xd0] ss:$8 sps:$4 sm:$0xff]  }
  0xce   : > { %769 = vmatprep.subr.bf16.mxu0 %v3138_v61  ;;  %v3182_v61 = vld [vmem:[#allocation10 + $0xc4] ss:$8 sps:$4 sm:$0xff]  }
  0xd0   : > { %1015 = vmatpush2.bf16.msra.mxu1 %v3137_v62 }
  0xd1   : > { %1016 = vmatprep.subr.bf16.mxu1 %v3141_v1  ;;  %770 = vmatpush2.bf16.msra.mxu0 %v3140_v2  ;;  %v3180_v1 = vld [vmem:[#allocation10 + $0xc0] ss:$8 sps:$4 sm:$0xff]  }
  0xd2   : > { %771 = vmatprep.subr.bf16.mxu0 %v3144_v3  ;;  %v3185_v3 = vld [vmem:[#allocation10 + $0xb4] ss:$8 sps:$4 sm:$0xff]  }
  0xd4   : > { %1017 = vmatpush2.bf16.msra.mxu1 %v3143_v4  ;;  %v3183_v4 = vld [vmem:[#allocation10 + $0xb0] ss:$8 sps:$4 sm:$0xff]  }
  0xd5   : > { %772 = vmatpush2.bf16.msra.mxu0 %v3146_v6  ;;  %2841 = vmatprep.subr.bf16.mxu1 %v3529_v8 }
  0xd6   : > { %1231 = vmatprep.subr.bf16.mxu0 %v3149_v37 }
  0xd7   : > { %1019 = vmatmul.mubr.bf16.vlgmr.msra.gmra.mxu1 %v535_v7 }
  0xd8   : > { %774 = vmatmul.mubr.bf16.vlgmr.msra.gmra.mxu0 %v535_v7  ;;  %2843 = vmatprep.mubr.msk.bf16.mxu1 %vm3530_vm0, %v3529_v8 }
  0xd9   : > { %1263 = vmatprep.mubr.bf16.mxu0 %v534_v38  ;;  %1232 = vmatpush1.bf16.msra.mxu0 %v3147_v36 }
  0xda   : > { %1233 = vmatprep.subr.bf16.mxu0 %v3152_v39 }
  0xdd   : > { %1234 = vmatpush1.bf16.msra.mxu0 %v3150_v40 }
  0xde   : > { %1235 = vmatprep.subr.bf16.mxu0 %v3155_v41 }
  0xe1   : > { %1236 = vmatpush1.bf16.msra.mxu0 %v3153_v42 }
  0xe2   : > { %1237 = vmatprep.subr.bf16.mxu0 %v3158_v43 }
  0xe5   : > { %1238 = vmatpush1.bf16.msra.mxu0 %v3156_v44 }
  0xe6   : > { %1239 = vmatprep.subr.bf16.mxu0 %v3161_v45 }
  0xe9   : > { %1240 = vmatpush1.bf16.msra.mxu0 %v3159_v47 }
  0xea   : > { %1241 = vmatprep.subr.bf16.mxu0 %v3164_v48 }
  0xed   : > { %1242 = vmatpush1.bf16.msra.mxu0 %v3162_v46 }
  0xee   : > { %1243 = vmatprep.subr.bf16.mxu0 %v3167_v49 }
  0xf1   : > { %1244 = vmatpush1.bf16.msra.mxu0 %v3165_v50 }
  0xf2   : > { %1245 = vmatprep.subr.bf16.mxu0 %v3170_v51 }
  0xf5   : > { %1246 = vmatpush1.bf16.msra.mxu0 %v3168_v52 }
  0xf6   : > { %1247 = vmatprep.subr.bf16.mxu0 %v3173_v53 }
  0xf9   : > { %1248 = vmatpush2.bf16.msra.mxu0 %v3171_v54 }
  0xfa   : > { %1249 = vmatprep.subr.bf16.mxu0 %v3176_v55 }
  0xfd   : > { %1250 = vmatpush2.bf16.msra.mxu0 %v3174_v57 }
  0xfe   : > { %1251 = vmatprep.subr.bf16.mxu0 %v3179_v59 }
 0x101   : > { %1252 = vmatpush2.bf16.msra.mxu0 %v3177_v60 }
 0x102   : > { %1253 = vmatprep.subr.bf16.mxu0 %v3182_v61 }
 0x105   : > { %1254 = vmatpush2.bf16.msra.mxu0 %v3180_v1 }
 0x106   : > { %1255 = vmatprep.subr.bf16.mxu0 %v3185_v3 }
 0x109   : > { %1256 = vmatpush2.bf16.msra.mxu0 %v3183_v4 }
 0x10a   : > { %1257 = vmatprep.subr.bf16.mxu0 %v3188_v5 }
 0x10d   : > { %1258 = vmatpush2.bf16.msra.mxu0 %v3186_v9 }
 0x10e   : > { %1259 = vmatprep.subr.bf16.mxu0 %v3191_v12 }
 0x111   : > { %1260 = vmatpush2.bf16.msra.mxu0 %v3189_v13 }
 0x197   : > { %v1020_v16 = vpop.f32.mrf.mxu1 }
 0x198   : > { %v1021_v17 = vadd.f32 %v1020_v16, %v819_v14  ;;  %v775_v19 = vpop.f32.mrf.mxu0  ;;  %v3194_v14 = vld [vmem:[#allocation10 + $0x84] ss:$8 sps:$4 sm:$0xff]   ;;  %v3192_v16 = vld [vmem:[#allocation10 + $0x80] ss:$8 sps:$4 sm:$0xff]  }
 0x199   : > { %v1022_v18 = vpop.f32.mrf.mxu1  ;;  %v776_v22 = vadd.f32 %v775_v19, %v574_v15  ;;  %1261 = vmatprep.subr.bf16.mxu0 %v3194_v14 }
 0x19a   : > { %v1288_v20 = vpack.c.bf16 %v1021_v17, %v1021_v17  ;;  %v777_v24 = vpop.f32.mrf.mxu0  ;;  %v1023_v32 = vadd.f32 %v1022_v18, %v823_v29  ;;  %v533_v18 = vpack.c.bf16 %v3844_v63, %v3844_v63  ;;  %1262 = vmatpush2.bf16.msra.mxu0 %v3192_v16 }
 0x19b   : > { %v1024_v23 = vpop.f32.mrf.mxu1  ;;  %v1272_v25 = vpack.c.bf16 %v776_v22, %v776_v22  ;;  %v778_v33 = vadd.f32 %v777_v24, %v578_v30 }
 0x19c   : > { %1293 = vrot.lane.b32.xlu1 %v1288_v20, %s3531_s18  ;;  %1291 = vrot.lane.b32.xlu0 %v1288_v20, %s3532_s29  ;;  %v1325_v26 = vsel %vm1320_vm1, %v1288_v20, 0  ;;  %v779_v28 = vpop.f32.mrf.mxu0  ;;  %v3875_v34 = vpack.c.bf16 %v1023_v32, %v1023_v32 }
 0x19d   : > { %v1025_v27 = vpop.f32.mrf.mxu1  ;;  %2842 = vmatpush3.bf16.xpose.msra.mxu1 %v1325_v26  ;;  %v3877_v35 = vpack.c.bf16 %v778_v33, %v778_v33  ;;  %1264 = vmatmul.mubr.bf16.vlgmr.msra.gmra.mxu0 %v533_v18  ;;  %v1059_v18 = vld [vmem:[%s4125_s8] sm:$0x3] }
 0x19e   : > { %2847 = vmatprep.subr.bf16.mxu1 %v3529_v8  ;;  %v780_v31 = vpop.f32.mrf.mxu0  ;;  %v1509_v17 = vsel %vm1320_vm1, %v3875_v34, 0 }
 0x1a0   : > { %1277 = vrot.lane.b32.xlu1 %v1272_v25, %s3531_s18  ;;  %1275 = vrot.lane.b32.xlu0 %v1272_v25, %s3532_s29 }
 0x1a4   : > { %1279 = vrot.lane.b32.xlu1 %v1272_v25, %s3533_s19  ;;  %1295 = vrot.lane.b32.xlu0 %v1288_v20, %s3533_s19 }
 0x1a5   : > { %2844 = vmatmul.mubr.msk.bf16.vlgmr.msra.gmra.mxu1 %vm1320_vm1, %v1272_v25 }
 0x1a6   : > { %2849 = vmatprep.mubr.msk.bf16.mxu1 %vm3530_vm0, %v3529_v8 }
 0x1a8   : > { %1282 = vrot.lane.b32.xlu1 %v3877_v35, %s3532_s29  ;;  %1298 = vrot.lane.b32.xlu0 %v3875_v34, %s3532_s29 }
 0x1ac   : > { %1284 = vrot.lane.b32.xlu1 %v3877_v35, %s3531_s18  ;;  %1300 = vrot.lane.b32.xlu0 %v3875_v34, %s3531_s18 }
 0x1b0   : > { %1286 = vrot.lane.b32.xlu1 %v3877_v35, %s3533_s19  ;;  %1302 = vrot.lane.b32.xlu0 %v3875_v34, %s3533_s19 }
 0x20e   : > { %v1292_v56 = vpop.permute.xlu0 %1291  ;;  %v1294_v62 = vpop.permute.xlu1 %1293 }
 0x20f   : > { %v1371_v58 = vsel %vm1320_vm1, %v1292_v56, 0  ;;  %v1417_v2 = vsel %vm1320_vm1, %v1294_v62, 0 }
 0x210   : > { %2848 = vmatpush3.bf16.xpose.msra.mxu1 %v1371_v58 }
 0x211   : > { %2853 = vmatprep.subr.bf16.mxu1 %v3529_v8 }
 0x212   : > { %v1276_v0 = vpop.permute.xlu0 %1275  ;;  %v1278_v7 = vpop.permute.xlu1 %1277 }
 0x216   : > { %v1296_v6 = vpop.permute.xlu0 %1295  ;;  %v1280_v15 = vpop.permute.xlu1 %1279 }
 0x217   : > { %2850 = vmatmul.mubr.msk.bf16.vlgmr.msra.gmra.mxu1 %vm1320_vm1, %v1276_v0  ;;  %v1463_v10 = vsel %vm1320_vm1, %v1296_v6, 0 }
 0x218   : > { %2854 = vmatpush3.bf16.xpose.msra.mxu1 %v1417_v2  ;;  %2855 = vmatprep.mubr.msk.bf16.mxu1 %vm3530_vm0, %v3529_v8 }
 0x219   : > { %2859 = vmatprep.subr.bf16.mxu1 %v3529_v8 }
 0x21a   : > { %v1299_v19 = vpop.permute.xlu0 %1298  ;;  %v1283_v23 = vpop.permute.xlu1 %1282 }
 0x21b   : > { %v1555_v20 = vsel %vm1320_vm1, %v1299_v19, 0 }
 0x21e   : > { %v1301_v22 = vpop.permute.xlu0 %1300  ;;  %v1285_v25 = vpop.permute.xlu1 %1284 }
 0x21f   : > { %2856 = vmatmul.mubr.msk.bf16.vlgmr.msra.gmra.mxu1 %vm1320_vm1, %v1278_v7  ;;  %v1601_v24 = vsel %vm1320_vm1, %v1301_v22, 0  ;;  %v1064_v22 = vrot.slane %v1059_v18, %v3852_v11 }
 0x220   : > { %2860 = vmatpush3.bf16.xpose.msra.mxu1 %v1463_v10  ;;  %2861 = vmatprep.mubr.msk.bf16.mxu1 %vm3530_vm0, %v3529_v8 }
 0x221   : > { %2865 = vmatprep.subr.bf16.mxu1 %v3529_v8 }
 0x222   : > { %v1303_v63 = vpop.permute.xlu0 %1302  ;;  %v1287_v27 = vpop.permute.xlu1 %1286 }
 0x223   : > { %v1647_v26 = vsel %vm1320_vm1, %v1303_v63, 0 }
 0x227   : > { %2862 = vmatmul.mubr.msk.bf16.vlgmr.msra.gmra.mxu1 %vm1320_vm1, %v1280_v15 }
 0x228   : > { %2866 = vmatpush3.bf16.xpose.msra.mxu1 %v1509_v17  ;;  %2867 = vmatprep.mubr.msk.bf16.mxu1 %vm3530_vm0, %v3529_v8 }
 0x229   : > { %2871 = vmatprep.subr.bf16.mxu1 %v3529_v8 }
 0x22f   : > { %2868 = vmatmul.mubr.msk.bf16.vlgmr.msra.gmra.mxu1 %vm1320_vm1, %v3877_v35 }
 0x230   : > { %2872 = vmatpush3.bf16.xpose.msra.mxu1 %v1555_v20  ;;  %2873 = vmatprep.mubr.msk.bf16.mxu1 %vm3530_vm0, %v3529_v8 }
 0x231   : > { %2877 = vmatprep.subr.bf16.mxu1 %v3529_v8 }
 0x237   : > { %2874 = vmatmul.mubr.msk.bf16.vlgmr.msra.gmra.mxu1 %vm1320_vm1, %v1283_v23  ;;  %v1068_v23 = vrot.slane %v1059_v18, %v3862_v21 }
 0x238   : > { %2878 = vmatpush3.bf16.xpose.msra.mxu1 %v1601_v24  ;;  %2879 = vmatprep.mubr.msk.bf16.mxu1 %vm3530_vm0, %v3529_v8 }
 0x239   : > { %2883 = vmatprep.subr.bf16.mxu1 %v3529_v8 }
 0x23f   : > { %2880 = vmatmul.mubr.msk.bf16.vlgmr.msra.gmra.mxu1 %vm1320_vm1, %v1285_v25 }
 0x240   : > { %2884 = vmatpush3.bf16.xpose.msra.mxu1 %v1647_v26  ;;  %2885 = vmatprep.mubr.msk.bf16.mxu1 %vm3530_vm0, %v3529_v8 }
 0x241   : > { %2889 = vmatprep.subr.bf16.mxu1 %v3529_v8 }
 0x247   : > { %2886 = vmatmul.mubr.msk.bf16.vlgmr.msra.gmra.mxu1 %vm1320_vm1, %v1287_v27 }
 0x248   : > { %2891 = vmatprep.mubr.msk.bf16.mxu1 %vm3530_vm0, %v3529_v8 }
 0x25d   : > { %v1265_v15 = vpop.f32.mrf.mxu0 }
 0x25e   : > { %v1266_v25 = vadd.f32 %v1265_v15, %v1064_v22 }
 0x25f   : > { %v1267_v19 = vpop.f32.mrf.mxu0 }
 0x260   : > { %v3969_v26 = vadd.f32 %v1267_v19, %v1068_v23 }
 0x261   : > { %v1269_v63 = vpop.f32.mrf.mxu0 }
 0x265   : > { %v1361_v28 = vpop.f32.mrf.mxu1 }
 0x266   : > { %v1689_v29 = vmul.f32 0.17677669, %v1361_v28  ;;  %v1270_v28 = vpop.f32.mrf.mxu0 }
 0x267   : > { %v2845_v30 = vpop.f32.mrf.mxu1 }
 0x268   : > { %v1698_v31 = vsel %vm1697_vm2, %v1689_v29, -inf }
 0x269   : > { %1699 = vmax.xlane.f32.xlu0 %v1698_v31  ;;  %v1364_v32 = vpop.f32.mrf.mxu1 }
 0x26b   : > { %v2846_v33 = vpop.f32.mrf.mxu1 }
 0x2d7   : > { %v1407_v34 = vpop.f32.mrf.mxu1 }
 0x2d8   : > { %v3935_v35 = vmul.f32 0.17677669, %v1407_v34 }
 0x2d9   : > { %v2851_v36 = vpop.f32.mrf.mxu1 }
 0x2da   : > { %v1701_v37 = vsel %vm1697_vm2, %v3935_v35, -inf }
 0x2db   : > { %1702 = vmax.xlane.f32.xlu1 %v1701_v37  ;;  %v1410_v38 = vpop.f32.mrf.mxu1 }
 0x2dd   : > { %v2852_v39 = vpop.f32.mrf.mxu1 }
 0x2df   : > { %v1453_v40 = vpop.f32.mrf.mxu1 }
 0x2e0   : > { %v3939_v41 = vmul.f32 0.17677669, %v1453_v40 }
 0x2e1   : > { %v2857_v42 = vpop.f32.mrf.mxu1 }
 0x2e2   : > { %v1704_v43 = vsel %vm1697_vm2, %v3939_v41, -inf }
 0x2e3   : > { %1705 = vmax.xlane.f32.xlu0 %v1704_v43  ;;  %v1456_v44 = vpop.f32.mrf.mxu1 }
 0x2e5   : > { %v2858_v45 = vpop.f32.mrf.mxu1 }
 0x2e7   : > { %v1499_v47 = vpop.f32.mrf.mxu1 }
 0x2e8   : > { %v3943_v48 = vmul.f32 0.17677669, %v1499_v47 }
 0x2e9   : > { %v2863_v46 = vpop.f32.mrf.mxu1 }
 0x2ea   : > { %v1707_v49 = vsel %vm1697_vm2, %v3943_v48, -inf }
 0x2eb   : > { %1708 = vmax.xlane.f32.xlu0 %v1707_v49  ;;  %v1502_v50 = vpop.f32.mrf.mxu1 }
 0x2ed   : > { %v2864_v51 = vpop.f32.mrf.mxu1 }
 0x2ef   : > { %v1545_v52 = vpop.f32.mrf.mxu1 }
 0x2f0   : > { %v3947_v53 = vmul.f32 0.17677669, %v1545_v52 }
 0x2f1   : > { %v2869_v54 = vpop.f32.mrf.mxu1 }
 0x2f2   : > { %v1700_v55 = vpop.xlane.xlu0 %1699  ;;  %v1710_v56 = vsel %vm1697_vm2, %v3947_v53, -inf }
 0x2f3   : > { %v1722_v57 = vsub.f32 %v1689_v29, %v1700_v55  ;;  %1711 = vmax.xlane.f32.xlu1 %v1710_v56  ;;  %v1548_v58 = vpop.f32.mrf.mxu1  ;;  %v1304_v29 = vpack.c.bf16 %v1266_v25, %v1266_v25 }
 0x2f5   : > { %v1730_v59 = vmul.f32 1.442695, %v1722_v57  ;;  %v2870_v60 = vpop.f32.mrf.mxu1  ;;  %v1799_v30 = vsel %vm1797_vm3, %v1304_v29, 0 }
 0x2f6   : > { %2890 = vmatpush3.bf16.msra.mxu1 %v1799_v30 }
 0x2f7   : > { %3243 = vpow2.f32 %v1730_v59  ;;  %v1591_v61 = vpop.f32.mrf.mxu1  ;;  %2895 = vmatprep.subr.bf16.mxu1 %v3529_v8 }
 0x2f8   : > { %v3951_v62 = vmul.f32 0.17677669, %v1591_v61 }
 0x2f9   : > { %v2875_v0 = vpop.f32.mrf.mxu1 }
 0x2fa   : > { %v1713_v1 = vsel %vm1697_vm2, %v3951_v62, -inf }
 0x2fb   : > { %1714 = vmax.xlane.f32.xlu0 %v1713_v1  ;;  %v1594_v2 = vpop.f32.mrf.mxu1 }
 0x2fd   : > { %v2876_v3 = vpop.f32.mrf.mxu1 }
 0x2ff   : > { %v1637_v4 = vpop.f32.mrf.mxu1 }
 0x300   : > { %v3955_v5 = vmul.f32 0.17677669, %v1637_v4 }
 0x301   : > { %v2881_v6 = vpop.f32.mrf.mxu1 }
 0x302   : > { %v1716_v7 = vsel %vm1697_vm2, %v3955_v5, -inf }
 0x303   : > { %1717 = vmax.xlane.f32.xlu1 %v1716_v7  ;;  %v1640_v9 = vpop.f32.mrf.mxu1  ;;  %v1305_v7 = vpack.c.bf16 %v3969_v26, %v3969_v26 }
 0x304   : > { %v3244_v10 = vpop.eup %3243 }
 0x305   : > { %v2882_v12 = vpop.f32.mrf.mxu1  ;;  %v1746_v13 = vsel %vm1697_vm2, %v3244_v10, 0.0  ;;  %v1983_v28 = vsel %vm1797_vm3, %v1305_v7, 0 }
 0x307   : > { %1747 = vadd.xlane.f32.xlu1 %v1746_v13  ;;  %v1683_v14 = vpop.f32.mrf.mxu1 }
 0x308   : > { %v3960_v16 = vmul.f32 0.17677669, %v1683_v14 }
 0x309   : > { %v2887_v17 = vpop.f32.mrf.mxu1 }
 0x30a   : > { %v1719_v20 = vsel %vm1697_vm2, %v3960_v16, -inf }
 0x30b   : > { %1720 = vmax.xlane.f32.xlu0 %v1719_v20  ;;  %v1686_v24 = vpop.f32.mrf.mxu1 }
 0x30d   : > { %v2888_v27 = vpop.f32.mrf.mxu1 }
 0x364   : > { %v1703_v31 = vpop.xlane.xlu1 %1702 }
 0x365   : > { %v1723_v32 = vsub.f32 %v3935_v35, %v1703_v31 }
 0x367   : > { %v1732_v33 = vmul.f32 1.442695, %v1723_v32 }
 0x369   : > { %3245 = vpow2.f32 %v1732_v33 }
 0x36c   : > { %v1706_v34 = vpop.xlane.xlu0 %1705 }
 0x36d   : > { %v1724_v36 = vsub.f32 %v3939_v41, %v1706_v34 }
 0x36f   : > { %v1734_v37 = vmul.f32 1.442695, %v1724_v36 }
 0x371   : > { %3247 = vpow2.f32 %v1734_v37 }
 0x374   : > { %v1709_v38 = vpop.xlane.xlu0 %1708 }
 0x375   : > { %v1725_v39 = vsub.f32 %v3943_v48, %v1709_v38 }
 0x376   : > { %v3246_v40 = vpop.eup %3245 }
 0x377   : > { %v1736_v42 = vmul.f32 1.442695, %v1725_v39  ;;  %v1749_v43 = vsel %vm1697_vm2, %v3246_v40, 0.0 }
 0x378   : > { %1750 = vadd.xlane.f32.xlu0 %v1749_v43 }
 0x379   : > { %3249 = vpow2.f32 %v1736_v42 }
 0x37c   : > { %v1712_v47 = vpop.xlane.xlu1 %1711 }
 0x37d   : > { %v1726_v50 = vsub.f32 %v3947_v53, %v1712_v47 }
 0x37e   : > { %v3977_v44 = vpop.eup %3247 }
 0x37f   : > { %v1752_v35 = vsel %vm1697_vm2, %v3977_v44, 0.0  ;;  %v1738_v56 = vmul.f32 1.442695, %v1726_v50 }
 0x380   : > { %1753 = vadd.xlane.f32.xlu1 %v1752_v35 }
 0x384   : > { %v1715_v51 = vpop.xlane.xlu0 %1714 }
 0x385   : > { %v1727_v55 = vsub.f32 %v3951_v62, %v1715_v51 }
 0x386   : > { %v3981_v45 = vpop.eup %3249 }
 0x387   : > { %v1755_v41 = vsel %vm1697_vm2, %v3981_v45, 0.0  ;;  %v1740_v59 = vmul.f32 1.442695, %v1727_v55 }
 0x388   : > { %1756 = vadd.xlane.f32.xlu0 %v1755_v41 }
 0x38c   : > { %v1718_v48 = vpop.xlane.xlu1 %1717 }
 0x38d   : > { %v1728_v57 = vsub.f32 %v3955_v5, %v1718_v48 }
 0x38f   : > { %v1742_v60 = vmul.f32 1.442695, %v1728_v57  ;;  %v3197_v57 = vld [vmem:[#allocation11 + $0x74] ss:$8 sps:$4 sm:$0xff]  }
 0x390   : > { %v1748_v46 = vpop.xlane.xlu1 %1747  ;;  %2401 = vmatprep.subr.bf16.mxu0 %v3197_v57 }
 0x391   : > { %1309 = vrot.lane.b32.xlu1 %v1304_v29, %s3531_s18  ;;  %3251 = vrcp.f32 %v1748_v46 }
 0x392   : > { %3253 = vpow2.f32 %v1738_v56  ;;  %v3195_v56 = vld [vmem:[#allocation11 + $0x70] ss:$8 sps:$4 sm:$0xff]  }
 0x393   : > { %3255 = vpow2.f32 %v1740_v59  ;;  %2402 = vmatpush1.bf16.msra.mxu0 %v3195_v56  ;;  %v3198_v59 = vld [vmem:[#allocation11 + $0x60] ss:$8 sps:$4 sm:$0xff]  }
 0x394   : > { %v1721_v58 = vpop.xlane.xlu0 %1720  ;;  %3257 = vpow2.f32 %v1742_v60  ;;  %v3203_v60 = vld [vmem:[#allocation11 + $0x54] ss:$8 sps:$4 sm:$0xff]  }
 0x395   : > { %1311 = vrot.lane.b32.xlu1 %v1304_v29, %s3533_s19  ;;  %v1729_v61 = vsub.f32 %v3960_v16, %v1721_v58  ;;  %v3200_v58 = vld [vmem:[#allocation11 + $0x64] ss:$8 sps:$4 sm:$0xff]  }
 0x396   : > { %2403 = vmatprep.subr.bf16.mxu0 %v3200_v58 }
 0x397   : > { %v1744_v53 = vmul.f32 1.442695, %v1729_v61  ;;  %2404 = vmatpush1.bf16.msra.mxu0 %v3198_v59  ;;  %v3201_v61 = vld [vmem:[#allocation11 + $0x50] ss:$8 sps:$4 sm:$0xff]  }
 0x398   : > { %2405 = vmatprep.subr.bf16.mxu0 %v3203_v60 }
 0x399   : > { %3259 = vpow2.f32 %v1744_v53  ;;  %v3206_v53 = vld [vmem:[#allocation11 + $0x44] ss:$8 sps:$4 sm:$0xff]  }
 0x39b   : > { %2406 = vmatpush1.bf16.msra.mxu0 %v3201_v61 }
 0x39c   : > { %2407 = vmatprep.subr.bf16.mxu0 %v3206_v53 }
 0x39e   : > { %1307 = vrot.lane.b32.xlu0 %v1304_v29, %s3532_s29  ;;  %v3252_v49 = vpop.eup %3251 }
 0x39f   : > { %v1778_v52 = vmul.f32 %v3252_v49, %v3244_v10  ;;  %v3254_v0 = vpop.eup %3253 }
 0x3a0   : > { %v3995_v62 = vpop.eup %3255  ;;  %v1758_v1 = vsel %vm1697_vm2, %v3254_v0, 0.0 }
 0x3a1   : > { %v1786_v54 = vpack.c.bf16 %v1778_v52, %v1778_v52  ;;  %v3998_v2 = vpop.eup %3257  ;;  %v1761_v3 = vsel %vm1697_vm2, %v3995_v62, 0.0 }
 0x3a2   : > { %v1764_v4 = vsel %vm1697_vm2, %v3998_v2, 0.0 }
 0x3a3   : > { %2892 = vmatmul.mubr.msk.bf16.vlgmr.msra.gmra.mxu1 %vm1697_vm2, %v1786_v54 }
 0x3a4   : > { %2897 = vmatprep.mubr.msk.bf16.mxu1 %vm3530_vm0, %v3529_v8 }
 0x3a6   : > { %v4004_v5 = vpop.eup %3259 }
 0x3a7   : > { %v1767_v6 = vsel %vm1697_vm2, %v4004_v5, 0.0 }
 0x3b9   : > { %1759 = vadd.xlane.f32.xlu1 %v1758_v1  ;;  %v3212_v1 = vld [vmem:[#allocation11 + $0x24] ss:$8 sps:$4 sm:$0xff]  }
 0x3bd   : > { %1762 = vadd.xlane.f32.xlu1 %v1761_v3  ;;  %1765 = vadd.xlane.f32.xlu0 %v1764_v4  ;;  %v3215_v3 = vld [vmem:[#allocation11 + $0x14] ss:$8 sps:$4 sm:$0xff]   ;;  %v3213_v4 = vld [vmem:[#allocation11 + $0x10] ss:$8 sps:$4 sm:$0xff]  }
 0x3c1   : > { %1768 = vadd.xlane.f32.xlu1 %v1767_v6  ;;  %v3216_v6 = vld [vmem:[#allocation11] ss:$8 sps:$4 sm:$0xff]  }
 0x3d2   : > { %1316 = vrot.lane.b32.xlu1 %v1305_v7, %s3531_s18 }
 0x3d3   : > { %1314 = vrot.lane.b32.xlu0 %v1305_v7, %s3532_s29 }
 0x3d7   : > { %1318 = vrot.lane.b32.xlu0 %v1305_v7, %s3533_s19  ;;  %v3221_v7 = vld [vmem:[#allocation11 + $0xf4] ss:$8 sps:$4 sm:$0xff]  }
 0x401   : > { %v1751_v9 = vpop.xlane.xlu0 %1750 }
 0x402   : > { %3261 = vrcp.f32 %v1751_v9  ;;  %v3219_v9 = vld [vmem:[#allocation11 + $0xf0] ss:$8 sps:$4 sm:$0xff]  }
 0x409   : > { %v1754_v10 = vpop.xlane.xlu1 %1753 }
 0x40a   : > { %3263 = vrcp.f32 %v1754_v10  ;;  %v3224_v10 = vld [vmem:[#allocation11 + $0xe4] ss:$8 sps:$4 sm:$0xff]  }
 0x40d   : > { %v1310_v17 = vpop.permute.xlu1 %1309 }
 0x40e   : > { %v1891_v20 = vsel %vm1797_vm3, %v1310_v17, 0 }
 0x40f   : > { %v3262_v12 = vpop.eup %3261 }
 0x410   : > { %v1779_v14 = vmul.f32 %v3262_v12, %v3246_v40  ;;  %v3222_v12 = vld [vmem:[#allocation11 + $0xe0] ss:$8 sps:$4 sm:$0xff]  }
 0x411   : > { %v1757_v13 = vpop.xlane.xlu0 %1756  ;;  %v1312_v23 = vpop.permute.xlu1 %1311 }
 0x412   : > { %3265 = vrcp.f32 %v1757_v13  ;;  %v1787_v18 = vpack.c.bf16 %v1779_v14, %v1779_v14  ;;  %v1937_v25 = vsel %vm1797_vm3, %v1312_v23, 0  ;;  %v3227_v13 = vld [vmem:[#allocation11 + $0xd4] ss:$8 sps:$4 sm:$0xff]  }
 0x415   : > { %v1308_v15 = vpop.permute.xlu0 %1307 }
 0x416   : > { %v1845_v16 = vsel %vm1797_vm3, %v1308_v15, 0  ;;  %v3225_v15 = vld [vmem:[#allocation11 + $0xd0] ss:$8 sps:$4 sm:$0xff]  }
 0x417   : > { %2896 = vmatpush3.bf16.msra.mxu1 %v1845_v16  ;;  %v3264_v19 = vpop.eup %3263 }
 0x418   : > { %2901 = vmatprep.subr.bf16.mxu1 %v3529_v8  ;;  %v1780_v22 = vmul.f32 %v3264_v19, %v3977_v44 }
 0x41a   : > { %2898 = vmatmul.mubr.msk.bf16.vlgmr.msra.gmra.mxu1 %vm1697_vm2, %v1787_v18  ;;  %v1788_v24 = vpack.c.bf16 %v1780_v22, %v1780_v22 }
 0x41b   : > { %2902 = vmatpush3.bf16.msra.mxu1 %v1891_v20  ;;  %2903 = vmatprep.mubr.msk.bf16.mxu1 %vm3530_vm0, %v3529_v8 }
 0x41c   : > { %2907 = vmatprep.subr.bf16.mxu1 %v3529_v8 }
 0x41f   : > { %v3266_v63 = vpop.eup %3265 }
 0x420   : > { %v1781_v26 = vmul.f32 %v3266_v63, %v3981_v45 }
 0x422   : > { %2904 = vmatmul.mubr.msk.bf16.vlgmr.msra.gmra.mxu1 %vm1697_vm2, %v1788_v24  ;;  %v1789_v27 = vpack.c.bf16 %v1781_v26, %v1781_v26 }
 0x423   : > { %2908 = vmatpush3.bf16.msra.mxu1 %v1937_v25  ;;  %2909 = vmatprep.mubr.msk.bf16.mxu1 %vm3530_vm0, %v3529_v8 }
 0x424   : > { %2913 = vmatprep.subr.bf16.mxu1 %v3529_v8 }
 0x42a   : > { %2910 = vmatmul.mubr.msk.bf16.vlgmr.msra.gmra.mxu1 %vm1697_vm2, %v1789_v27  ;;  %v3230_v27 = vld [vmem:[#allocation11 + $0xc4] ss:$8 sps:$4 sm:$0xff]  }
 0x42b   : > { %2914 = vmatpush3.bf16.msra.mxu1 %v1983_v28  ;;  %2915 = vmatprep.mubr.msk.bf16.mxu1 %vm3530_vm0, %v3529_v8 }
 0x42c   : > { %2919 = vmatprep.subr.bf16.mxu1 %v3529_v8 }
 0x442   : > { %v1760_v29 = vpop.xlane.xlu1 %1759 }
 0x443   : > { %3267 = vrcp.f32 %v1760_v29  ;;  %v3228_v29 = vld [vmem:[#allocation11 + $0xc0] ss:$8 sps:$4 sm:$0xff]  }
 0x446   : > { %v1763_v30 = vpop.xlane.xlu1 %1762  ;;  %v1766_v31 = vpop.xlane.xlu0 %1765 }
 0x447   : > { %3269 = vrcp.f32 %v1763_v30  ;;  %v3233_v30 = vld [vmem:[#allocation11 + $0xb4] ss:$8 sps:$4 sm:$0xff]  }
 0x448   : > { %3271 = vrcp.f32 %v1766_v31 }
 0x44a   : > { %v1315_v34 = vpop.permute.xlu0 %1314  ;;  %v1769_v38 = vpop.xlane.xlu1 %1768 }
 0x44b   : > { %v2029_v39 = vsel %vm1797_vm3, %v1315_v34, 0  ;;  %3273 = vrcp.f32 %v1769_v38  ;;  %v3234_v38 = vld [vmem:[#allocation11 + $0xa0] ss:$8 sps:$4 sm:$0xff]  }
 0x44e   : > { %v1317_v42 = vpop.permute.xlu1 %1316  ;;  %v1319_v41 = vpop.permute.xlu0 %1318 }
 0x44f   : > { %v2075_v35 = vsel %vm1797_vm3, %v1317_v42, 0  ;;  %v2121_v49 = vsel %vm1797_vm3, %v1319_v41, 0 }
 0x450   : > { %v3268_v32 = vpop.eup %3267 }
 0x451   : > { %v1782_v33 = vmul.f32 %v3268_v32, %v3254_v0  ;;  %v3209_v0 = vld [vmem:[#allocation11 + $0x34] ss:$8 sps:$4 sm:$0xff]   ;;  %v3231_v32 = vld [vmem:[#allocation11 + $0xb0] ss:$8 sps:$4 sm:$0xff]  }
 0x453   : > { %v1790_v36 = vpack.c.bf16 %v1782_v33, %v1782_v33 }
 0x454   : > { %v3270_v37 = vpop.eup %3269 }
 0x455   : > { %2916 = vmatmul.mubr.msk.bf16.vlgmr.msra.gmra.mxu1 %vm1697_vm2, %v1790_v36  ;;  %v1783_v40 = vmul.f32 %v3270_v37, %v3995_v62  ;;  %v3272_v44 = vpop.eup %3271  ;;  %v3207_v62 = vld [vmem:[#allocation11 + $0x30] ss:$8 sps:$4 sm:$0xff]   ;;  %v3236_v36 = vld [vmem:[#allocation11 + $0xa4] ss:$8 sps:$4 sm:$0xff]  }
 0x456   : > { %2920 = vmatpush3.bf16.msra.mxu1 %v2029_v39  ;;  %2921 = vmatprep.mubr.msk.bf16.mxu1 %vm3530_vm0, %v3529_v8  ;;  %v1784_v45 = vmul.f32 %v3272_v44, %v3998_v2  ;;  %v3210_v2 = vld [vmem:[#allocation11 + $0x20] ss:$8 sps:$4 sm:$0xff]   ;;  %v3239_v39 = vld [vmem:[#allocation11 + $0x94] ss:$8 sps:$4 sm:$0xff]  }
 0x457   : > { %2925 = vmatprep.subr.bf16.mxu1 %v3529_v8  ;;  %v1791_v43 = vpack.c.bf16 %v1783_v40, %v1783_v40 }
 0x458   : > { %v1792_v47 = vpack.c.bf16 %v1784_v45, %v1784_v45  ;;  %v3274_v48 = vpop.eup %3273  ;;  %v3242_v45 = vld [vmem:[#allocation11 + $0x84] ss:$8 sps:$4 sm:$0xff]  }
 0x459   : > { %v1785_v51 = vmul.f32 %v3274_v48, %v4004_v5  ;;  %v3218_v5 = vld [vmem:[#allocation11 + $0x4] ss:$8 sps:$4 sm:$0xff]  }
 0x45b   : > { %v1793_v55 = vpack.c.bf16 %v1785_v51, %v1785_v51 }
 0x45d   : > { %2922 = vmatmul.mubr.msk.bf16.vlgmr.msra.gmra.mxu1 %vm1697_vm2, %v1791_v43  ;;  %v3237_v43 = vld [vmem:[#allocation11 + $0x90] ss:$8 sps:$4 sm:$0xff]  }
 0x45e   : > { %2926 = vmatpush3.bf16.msra.mxu1 %v2075_v35  ;;  %2927 = vmatprep.mubr.msk.bf16.mxu1 %vm3530_vm0, %v3529_v8 }
 0x45f   : > { %2931 = vmatprep.subr.bf16.mxu1 %v3529_v8 }
 0x463   : > { %v4044_v46 = vpop.f32.mrf.mxu1 }
 0x465   : > { %2928 = vmatmul.mubr.msk.bf16.vlgmr.msra.gmra.mxu1 %vm1697_vm2, %v1792_v47  ;;  %v2893_v50 = vpop.f32.mrf.mxu1  ;;  %v3240_v47 = vld [vmem:[#allocation11 + $0x80] ss:$8 sps:$4 sm:$0xff]  }
 0x466   : > { %2932 = vmatpush3.bf16.msra.mxu1 %v2121_v49  ;;  %2933 = vmatprep.mubr.msk.bf16.mxu1 %vm3530_vm0, %v3529_v8  ;;  %v3204_v8 = vld [vmem:[#allocation11 + $0x40] ss:$8 sps:$4 sm:$0xff]  }
 0x467   : > { %v1838_v52 = vpop.f32.mrf.mxu1  ;;  %2408 = vmatpush1.bf16.msra.mxu0 %v3204_v8 }
 0x468   : > { %2409 = vmatprep.subr.bf16.mxu0 %v3209_v0 }
 0x469   : > { %v2894_v54 = vpop.f32.mrf.mxu1 }
 0x46b   : > { %2410 = vmatpush1.bf16.msra.mxu0 %v3207_v62 }
 0x46c   : > { %2411 = vmatprep.subr.bf16.mxu0 %v3212_v1 }
 0x46d   : > { %2934 = vmatmul.mubr.msk.bf16.vlgmr.msra.gmra.mxu1 %vm1697_vm2, %v1793_v55 }
 0x46f   : > { %2412 = vmatpush1.bf16.msra.mxu0 %v3210_v2 }
 0x470   : > { %2413 = vmatprep.subr.bf16.mxu0 %v3215_v3 }
 0x473   : > { %2414 = vmatpush1.bf16.msra.mxu0 %v3213_v4 }
 0x474   : > { %2415 = vmatprep.subr.bf16.mxu0 %v3218_v5 }
 0x477   : > { %2416 = vmatpush1.bf16.msra.mxu0 %v3216_v6 }
 0x478   : > { %2417 = vmatprep.subr.bf16.mxu0 %v3221_v7 }
 0x47b   : > { %2418 = vmatpush2.bf16.msra.mxu0 %v3219_v9 }
 0x47c   : > { %2419 = vmatprep.subr.bf16.mxu0 %v3224_v10 }
 0x47f   : > { %2420 = vmatpush2.bf16.msra.mxu0 %v3222_v12  ;;  %v2229_v12 = vld [vmem:[%s4126_s9] sm:$0x3] }
 0x480   : > { %2421 = vmatprep.subr.bf16.mxu0 %v3227_v13  ;;  %v2238_v13 = vrot.slane %v2229_v12, %v3862_v21 }
 0x483   : > { %2422 = vmatpush2.bf16.msra.mxu0 %v3225_v15 }
 0x484   : > { %2423 = vmatprep.subr.bf16.mxu0 %v3230_v27 }
 0x487   : > { %2424 = vmatpush2.bf16.msra.mxu0 %v3228_v29 }
 0x488   : > { %2425 = vmatprep.subr.bf16.mxu0 %v3233_v30 }
 0x48b   : > { %2426 = vmatpush2.bf16.msra.mxu0 %v3231_v32 }
 0x48c   : > { %2427 = vmatprep.subr.bf16.mxu0 %v3236_v36  ;;  %v2458_v36 = vld [vmem:[%s4127_s10] sm:$0x3] }
 0x48f   : > { %2428 = vmatpush2.bf16.msra.mxu0 %v3234_v38  ;;  %v2467_v38 = vrot.slane %v2458_v36, %v3862_v21 }
 0x490   : > { %2429 = vmatprep.subr.bf16.mxu0 %v3239_v39  ;;  %v2474_v39 = vld [vmem:[%s4128_s11] sm:$0x3] }
 0x493   : > { %2430 = vmatpush2.bf16.msra.mxu0 %v3237_v43  ;;  %v2479_v43 = vrot.slane %v2474_v39, %v3852_v11 }
 0x494   : > { %2431 = vmatprep.subr.bf16.mxu0 %v3242_v45 }
 0x497   : > { %2432 = vmatpush2.bf16.msra.mxu0 %v3240_v47 }
 0x4da   : > { %v1881_v14 = vpop.f32.mrf.mxu1 }
 0x4dc   : > { %v2899_v16 = vpop.f32.mrf.mxu1 }
 0x4de   : > { %v1884_v17 = vpop.f32.mrf.mxu1 }
 0x4e0   : > { %v2900_v18 = vpop.f32.mrf.mxu1 }
 0x4e2   : > { %v1927_v19 = vpop.f32.mrf.mxu1 }
 0x4e4   : > { %v2905_v20 = vpop.f32.mrf.mxu1 }
 0x4e6   : > { %v1930_v22 = vpop.f32.mrf.mxu1 }
 0x4e7   : > { %v3278_v22 = vld [vmem:[%s3813_s5 + $0x8] sm:$0xff] }
 0x4e8   : > { %v2906_v23 = vpop.f32.mrf.mxu1 }
 0x4ea   : > { %v1973_v24 = vpop.f32.mrf.mxu1 }
 0x4ec   : > { %v2911_v63 = vpop.f32.mrf.mxu1 }
 0x4ee   : > { %v1976_v25 = vpop.f32.mrf.mxu1 }
 0x4f0   : > { %v2912_v26 = vpop.f32.mrf.mxu1 }
 0x515   : > { %v2019_v28 = vpop.f32.mrf.mxu1 }
 0x517   : > { %v2917_v31 = vpop.f32.mrf.mxu1 }
 0x519   : > { %v2022_v33 = vpop.f32.mrf.mxu1 }
 0x51b   : > { %v2918_v34 = vpop.f32.mrf.mxu1 }
 0x51d   : > { %v2065_v37 = vpop.f32.mrf.mxu1 }
 0x51e   : > { %v3036_v40 = vpack.i.bf16 %v1881_v14, %v2065_v37  ;;  %v2463_v37 = vrot.slane %v2458_v36, %v3852_v11 }
 0x51f   : > { %v2923_v42 = vpop.f32.mrf.mxu1 }
 0x520   : > { %3037 = vrot.lane.b32.xlu0 %v3036_v40, %s3533_s19  ;;  %s3439_s19 = scalar_lea.vmem %s2506_s26, 256 }
 0x521   : > { %v2068_v44 = vpop.f32.mrf.mxu1  ;;  %p3440_p2 = scmp.ne.s32.totalorder %s2506_s26, %s3439_s19  ;;  %p3447_p4 = scmp.lt.s32.totalorder %s3445_s2, %s3439_s19 }
 0x522   : > { %v2483_v44 = vrot.slane %v2474_v39, %v3862_v21 }
 0x523   : > { %v2924_v35 = vpop.f32.mrf.mxu1  ;;  %p3441_p11 = pnand %p3440_p2, %p4167_p9  ;;  %p3448_p6 = por %p3447_p4, %p3446_p1 }
 0x525   : > { %v2111_v41 = vpop.f32.mrf.mxu1  ;;  %p3442_p13 = pneg %p3441_p11 }
 0x526   : > { %v3041_v48 = vpack.i.bf16 %v1927_v19, %v2111_v41  ;;  %v3277_v19 = vld [vmem:[%s3813_s5] sm:$0xff] }
 0x527   : > { %v2929_v49 = vpop.f32.mrf.mxu1  ;;  %p3449_p3 = pnand %p3448_p6, %p3442_p13 }
 0x528   : > { %3042 = vrot.lane.b32.xlu1 %v3041_v48, %s3531_s18  ;;  %s4080_s18 = scalar_lea.hbm %s4129_s12, %s2808_s14 }
 0x529   : > { %v2114_v50 = vpop.f32.mrf.mxu1 }
 0x52b   : > { %v2930_v51 = vpop.f32.mrf.mxu1 }
 0x52d   : > { %v2157_v52 = vpop.f32.mrf.mxu1 }
 0x52e   : > { %v3046_v54 = vpack.i.bf16 %v1973_v24, %v2157_v52 }
 0x52f   : > { %v2935_v55 = vpop.f32.mrf.mxu1 }
 0x530   : > { %3047 = vrot.lane.b32.xlu0 %v3046_v54, %s3532_s29  ;;  %s2491_s29 = scalar_lea.sflag [#allocation4], %s3806_s16 }
 0x531   : > { %v2160_v56 = vpop.f32.mrf.mxu1 }
 0x533   : > { %v2936_v57 = vpop.f32.mrf.mxu1 }
 0x592   : > { %v3038_v58 = vpop.permute.xlu0 %3037 }
 0x593   : > { %v3040_v60 = vunpack.i.h.bf16 %v3038_v58  ;;  %v3039_v61 = vunpack.i.l.bf16 %v3038_v58 }
 0x595   : > { %v2187_v62 = vsel %vm1320_vm1, %v4044_v46, %v3040_v60  ;;  %v2192_v1 = vsel %vm1320_vm1, %v2019_v28, %v3039_v61  ;;  %v2234_v46 = vrot.slane %v2229_v12, %v3852_v11 }
 0x59a   : > { %v3043_v59 = vpop.permute.xlu1 %3042 }
 0x59b   : > { %v3045_v53 = vunpack.i.h.bf16 %v3043_v59  ;;  %v3044_v8 = vunpack.i.l.bf16 %v3043_v59 }
 0x59d   : > { %v2189_v4 = vsel %vm2188_vm4, %v2187_v62, %v3045_v53  ;;  %v2193_v5 = vsel %vm2188_vm4, %v2192_v1, %v3044_v8 }
 0x5a2   : > { %v3048_v0 = vpop.permute.xlu0 %3047 }
 0x5a3   : > { %v3050_v2 = vunpack.i.h.bf16 %v3048_v0  ;;  %v3049_v3 = vunpack.i.l.bf16 %v3048_v0 }
 0x5a5   : > { %v2191_v6 = vsel %vm2190_vm5, %v2189_v4, %v3050_v2  ;;  %v2194_v7 = vsel %vm2190_vm5, %v2193_v5, %v3049_v3 }
 0x5a6   : > { %v2195_v9 = vpack.c.bf16 %v2191_v6, %v2191_v6  ;;  %v2196_v10 = vpack.c.bf16 %v2194_v7, %v2194_v7 }
 0x5a8   : > { %2433 = vmatprep.mubr.bf16.mxu0 %v2196_v10 }
 0x5a9   : > { %2434 = vmatmul.mubr.bf16.vlgmr.msra.gmra.mxu0 %v2195_v9 }
 0x669   : > { %v2435_v14 = vpop.f32.mrf.mxu0 }
 0x66a   : > { %v2436_v15 = vadd.f32 %v2435_v14, %v2234_v46 }
 0x66b   : > { %v2437_v16 = vpop.f32.mrf.mxu0 }
 0x66c   : > { %v2438_v17 = vadd.f32 %v2437_v16, %v2238_v13  ;;  %v2442_v20 = vadd.f32 %v3277_v19, %v2436_v15 }
 0x66d   : > { %v2439_v18 = vpop.f32.mrf.mxu0 }
 0x66e   : > { %v2443_v23 = vadd.f32 %v3278_v22, %v2438_v17 }
 0x66f   : > { %v2440_v24 = vpop.f32.mrf.mxu0 }
 0x670   : > { %v2444_v63 = vadd.f32 %v2443_v23, %v2442_v20 }
 0x672   : > { %2445 = vadd.xlane.f32.xlu1 %v2444_v63 }
 0x6fb   : > { %v2446_v25 = vpop.xlane.xlu1 %2445 }
 0x6fc   : > { %v2447_v26 = vmul.f32 0.00390625, %v2446_v25 }
 0x6fe   : > { %v2448_v27 = vsub.f32 %v2442_v20, %v2447_v26  ;;  %v2449_v28 = vsub.f32 %v2443_v23, %v2447_v26 }
 0x700   : > { %v2450_v29 = vmul.f32 %v2448_v27, %v2448_v27  ;;  %v2451_v30 = vmul.f32 %v2449_v28, %v2449_v28  ;;  %v2470_v40 = vmul.f32 %v2463_v37, %v2448_v27  ;;  %v2471_v42 = vmul.f32 %v2467_v38, %v2449_v28 }
 0x702   : > { %v2452_v31 = vadd.f32 %v2451_v30, %v2450_v29 }
 0x704   : > { %2453 = vadd.xlane.f32.xlu0 %v2452_v31 }
 0x78d   : > { %v2454_v32 = vpop.xlane.xlu0 %2453 }
 0x78e   : > { %v2455_v33 = vmul.f32 0.00390625, %v2454_v32 }
 0x790   : > { %v2456_v34 = vadd.f32 1e-05, %v2455_v33 }
 0x792   : > { %3275 = vrsqrt.f32 %v2456_v34 }
 0x79f   : > { %v3276_v35 = vpop.eup %3275 }
 0x7a0   : > { %v2472_v45 = vmul.f32 %v3276_v35, %v2470_v40  ;;  %v2473_v41 = vmul.f32 %v3276_v35, %v2471_v42 }
 0x7a2   : > { %v2486_v47 = vadd.f32 %v2479_v43, %v2472_v45  ;;  %v2487_v48 = vadd.f32 %v2483_v44, %v2473_v41 }
 0x7a4   : > { %2488 = vst [vmem:[%s525_s17] sm:$0xff] %v2486_v47  ;;  %2489 = vst [vmem:[%s525_s17 + $0x8] sm:$0xff] %v2487_v48 }
 0x7a5   : > { %3452 = shalt.err (!%p3449_p3)
}
 0x7a6   : > { %s3453_s3 = scalar_lea.hbm %s4080_s18, 256  ;;  %s3457_s15 = scalar_lea.hbm %s4129_s12, 512 }
 0x7a7   : > { %p3454_p7 = scmp.ne.s32.totalorder %s4080_s18, %s3453_s3  ;;  %p3458_p8 = scmp.lt.s32.totalorder %s4080_s18, %s4129_s12 }
 0x7a8   : > { %p3459_p12 = scmp.lt.s32.totalorder %s3457_s15, %s3453_s3 }
 0x7a9   : > { %p3455_p10 = pnand %p3454_p7, %p4167_p9 }
 0x7aa   : > { %p3460_p0 = por %p3459_p12, %p3458_p8 }
 0x7ab   : > { %p3456_p5 = pneg %p3455_p10 }
 0x7ad   : > { %p3461_p2 = pnand %p3460_p0, %p3456_p5 }
 0x7af   : > { %3464 = shalt.err (!%p3461_p2)
}
 0x7b0   : > { %2957 = dma.vmem_to_hbm [thread:$0]  (%p4167_p9), %s2506_s26, 256, %s4080_s18, %s2491_s29  }
 0x7b1 PF: > { %s4168_s4 = sld [smem:[#allocation20_spill]]  ;;  %p4171_p13 = scmp.ge.s32.totalorder %s3519_s24, 2 }
 0x7b2   : > { %s4169_s28 = sld [smem:[#allocation24_spill]] }
 0x7b7   : > { %s2517_s14 = sand.u32 1, %s4168_s4  }
 0x7b8   : > { %p4170_p11 = scmp.ne.s32.totalorder %s4169_s28, 0  ;;  %s2518_s17 = scalar_lea.sflag [#allocation4], %s2517_s14 }
 0x7ba   : > { %p2980_p1 = pnand %p4171_p13, %p4170_p11 }
 0x7bc   : > { %p2981_p4 = pneg %p2980_p1 }
 0x7be   : > { %3502 = dma.done.wait (%p2981_p4), %s2518_s17, 256  }
 0x7bf   : > { %3504 = vsyncadd (%p2981_p4), %s2518_s17, 4294967040  ;;  %s4172_s24 = sld [smem:[#allocation22_spill]]  ;;  %s4175_s21 = smov %s3511_s22 }
 0x7c0   : > { %s4173_s25 = sld [smem:[#allocation21_spill]] }
 0x7c1   : > { %s4174_s23 = sld [smem:[#allocation23_spill]] }
 0x7c5   : > { %p30_p6 = scmp.ge.s32.totalorder %s4172_s24, 4  }
 0x7c6   : > { %s4176_s22 = smov %s4173_s25 }
 0x7c7   :  { %32 = sbr.rel (!%p30_p6) target bundleno = 14 (0xe), region = 142 }
 0x7cc   :  { %2523 = vsyncpa [#allocation3], 1 }
 0x7cd   :  { %2525 = vsyncpa [#allocation3 + $0x1], 1 }
 0x7ce   :  { %2526 = vsyncpa [#allocation6], 1 }
 0x7cf   :  { %2528 = vsyncpa [#allocation6 + $0x1], 1 }
 0x7d0   :  { %2529 = vsyncpa [#allocation9], 1 }
 0x7d1   :  { %2530 = vsyncpa [#allocation12], 1 }
 0x7d2   :  { %2531 = vsyncpa [#allocation4], 1 }
 0x7d3   :  { %2533 = vsyncpa [#allocation4 + $0x1], 1 }

</bundles_post_ra>
